<compile_context>
chip_gen: v5e
topology: v5e:2x2
jax: 0.10.0
libtpu: 0.0.40
codegen_flags: <defaults>
</compile_context>

<pallas_src>
import functools

import numpy as np
import jax
import jax.numpy as jnp
from jax import lax
from jax.experimental import pallas as pl
from jax.experimental.pallas import tpu as pltpu


def _round_up(x, m):
    return ((x + m - 1) // m) * m


def _knn_kernel(q_ref, p_ref, idx_ref, dst_ref, dd_ref, best_d_ref, best_i_ref, *,
                k, n_points, tp, metric, ignore_query_point):
    """One (query tile) x (point tile) grid step.

    q_ref    : (TQ, 3)  f32 VMEM   query positions
    p_ref    : (8, TP)  f32 VMEM   coord-major point tile (rows 0..2 = x,y,z)
    idx_ref  : (TQ, KP) i32        output indices   (resident across point tiles)
    dst_ref  : (TQ, KP) f32        output distances (resident across point tiles)
    dd_ref   : (TQ, TP) f32 VMEM   distance plane scratch for the knockout passes
    best_*   : (TQ, k)  VMEM       running top-k across point tiles
    """
    pi = pl.program_id(1)
    n_ptiles = pl.num_programs(1)
    tq = q_ref.shape[0]
    n_chunks = tp // 128
    big = jnp.float32(jnp.inf)
    int_big = jnp.int32(2 ** 30)

    @pl.when(pi == 0)
    def _init():
        best_d_ref[...] = jnp.full_like(best_d_ref, big)
        best_i_ref[...] = jnp.zeros_like(best_i_ref)

    qpos = q_ref[...]                               # (TQ, 3)
    qx = qpos[:, 0:1]
    qy = qpos[:, 1:2]
    qz = qpos[:, 2:3]

    base_iota = lax.broadcasted_iota(jnp.int32, (tq, 128), 1)   # hoisted lane ids
    kcol = lax.broadcasted_iota(jnp.int32, (tq, k), 1)
    tile_off = pi * tp                              # global index of this tile's lane 0

    # Running best from previous point tiles; carried in registers for this step
    # and folded into every knockout pass (no separate merge step).
    best_v = best_d_ref[...]                        # (TQ, k)
    best_i = best_i_ref[...]

    new_bd = jnp.full((tq, k), big, jnp.float32)
    new_bi = jnp.zeros((tq, k), jnp.int32)
    prev_win = None                                 # previous pass's winner index

    for j in range(k):
        run_v = jnp.full((tq, 128), big, jnp.float32)
        run_i = jnp.zeros((tq, 128), jnp.int32)

        for c in range(n_chunks):
            sl = slice(c * 128, (c + 1) * 128)
            gidx = base_iota + (tile_off + c * 128)           # global point ids
            if j == 0:
                # Fused distance compute on the VPU (direct difference: exact 0 for
                # coincident points; sentinel-padded columns come out ~inf).
                px = p_ref[0:1, sl]
                py = p_ref[1:2, sl]
                pz = p_ref[2:3, sl]
                dx = qx - px
                dy = qy - py
                dz = qz - pz
                if metric == "L2":
                    d = dx * dx + dy * dy + dz * dz
                elif metric == "L1":
                    d = jnp.abs(dx) + jnp.abs(dy) + jnp.abs(dz)
                else:                                          # Linf
                    d = jnp.maximum(jnp.maximum(jnp.abs(dx), jnp.abs(dy)),
                                    jnp.abs(dz))
                if ignore_query_point:
                    d = jnp.where(d == 0.0, big, d)
                if k > 1:
                    dd_ref[:, sl] = d                          # keep for later passes
            else:
                d = dd_ref[:, sl]
                # Knock the previous pass's winner out of the plane, fused into the
                # read; write back so later passes only ever exclude one index.
                d = jnp.where(gidx == prev_win, big, d)
                if j < k - 1:
                    dd_ref[:, sl] = d
            better = d < run_v
            run_v = jnp.where(better, d, run_v)
            run_i = jnp.where(better, gidx, run_i)

        # Cheap (TQ,128) finish: value min, then masked index min (lowest index wins
        # ties -- consistent with the per-lane tie-break inside the sweep).
        dmin_p = jnp.min(run_v, axis=1, keepdims=True)
        amin_p = jnp.min(jnp.where(run_v <= dmin_p, run_i, int_big),
                         axis=1, keepdims=True)

        # Fold in the running best from previous tiles (width-k masked min).
        dmin_b = jnp.min(best_v, axis=1, keepdims=True)
        amin_b = jnp.min(jnp.where(best_v <= dmin_b, best_i, int_big),
                         axis=1, keepdims=True)

        use_b = dmin_b <= dmin_p                     # older (lower) index wins ties
        dmin = jnp.where(use_b, dmin_b, dmin_p)
        amin = jnp.where(use_b, amin_b, amin_p)

        # Knock the winner out of the running best; indices are globally unique so
        # this is a no-op when the winner came from the current plane.
        best_v = jnp.where(best_i == amin, big, best_v)

        sel = kcol == j
        new_bd = jnp.where(sel, dmin, new_bd)
        new_bi = jnp.where(sel, amin, new_bi)
        prev_win = amin

    best_d_ref[...] = new_bd
    best_i_ref[...] = new_bi

    @pl.when(pi == n_ptiles - 1)
    def _finalize():
        # Clamp exhausted-slot sentinels into range so downstream gathers stay in
        # bounds (their distance stays +inf to flag them).
        bi = jnp.minimum(new_bi, n_points - 1)
        bd = new_bd
        pad = idx_ref.shape[1] - k
        if pad:                                      # lane-dense (unmasked) stores
            bi = jnp.concatenate([bi, jnp.zeros((tq, pad), jnp.int32)], axis=1)
            bd = jnp.concatenate([bd, jnp.zeros((tq, pad), jnp.float32)], axis=1)
        idx_ref[...] = bi.astype(idx_ref.dtype)
        dst_ref[...] = bd


def knn_search(points, queries, k, *, metric="L2", ignore_query_point=False,
               return_distances=True, index_dtype=jnp.int32, tq=None, tp=4096):
    """JAX/Pallas equivalent of KNNSearch.forward (single batch item).

    Returns (neighbors_index, neighbors_row_splits, neighbors_distance).
    """
    # TODO(synk): batched inputs via points_row_splits/queries_row_splits (ragged,
    # per-batch-item search) are not supported; single batch item, N >= k assumed.
    assert metric in ("L1", "L2", "Linf")
    assert index_dtype in (jnp.int32, jnp.int64)
    n, q = points.shape[0], queries.shape[0]
    assert 1 <= k <= n, "dense (Q, k) output assumes at least k candidate points"

    # Query tile: keep the (TQ,128) sweep carries register-resident (64 rows = 8
    # vregs per carry) and guarantee >= 2 tiles on the parallel axis for small Q so
    # both v7x TensorCores get work.  Multiple of 8 sublanes.
    if tq is None:
        tq = min(64, max(8, _round_up((q + 1) // 2, 8)))
    tq = max(8, _round_up(tq, 8))
    qp_pad = _round_up(q, tq)

    # Point tile: lane multiple; 4096 amortizes the per-grid-step overhead and the
    # per-pass (TQ,128) finishes while keeping the dd scratch at ~1 MiB (safe under
    # v5e's 16 MiB / v7x's 32 MiB default scoped VMEM without vmem_limit_bytes).
    tp = max(128, _round_up(min(tp, _round_up(n, 128)), 128))
    np_pad = _round_up(n, tp)

    kp = _round_up(k, 128)                           # lane-dense output columns

    # Coord-major points (rows 0..2 = x,y,z).  Padded columns get a huge sentinel
    # coordinate so their distance sorts last with no in-kernel masking.  Rows 3..7
    # are unread padding; a (3, NP) layout would cut the point-stream HBM traffic
    # 2.7x but the kernel is compute-bound, so the known-good (8, NP) layout stays.
    sent = jnp.float32(1e30)
    pts_t = jnp.full((8, np_pad), sent, jnp.float32).at[:3, :n].set(
        points.astype(jnp.float32).T)
    qry = jnp.zeros((qp_pad, 3), jnp.float32).at[:q].set(
        queries.astype(jnp.float32))

    kern = functools.partial(_knn_kernel, k=k, n_points=n, tp=tp, metric=metric,
                             ignore_query_point=ignore_query_point)

    idx, dst = pl.pallas_call(
        kern,
        out_shape=(jax.ShapeDtypeStruct((qp_pad, kp), jnp.int32),
                   jax.ShapeDtypeStruct((qp_pad, kp), jnp.float32)),
        grid_spec=pltpu.PrefetchScalarGridSpec(
            num_scalar_prefetch=0,
            grid=(qp_pad // tq, np_pad // tp),
            in_specs=[pl.BlockSpec((tq, 3), lambda qi, pi: (qi, 0)),   # query tile
                      pl.BlockSpec((8, tp), lambda qi, pi: (0, pi))],  # point tile
            out_specs=[pl.BlockSpec((tq, kp), lambda qi, pi: (qi, 0)),
                       pl.BlockSpec((tq, kp), lambda qi, pi: (qi, 0))],
            scratch_shapes=[pltpu.VMEM((tq, tp), jnp.float32),   # distance plane
                            pltpu.VMEM((tq, k), jnp.float32),    # running best d
                            pltpu.VMEM((tq, k), jnp.int32)]),    # running best i
        compiler_params=pltpu.CompilerParams(
            dimension_semantics=("parallel", "arbitrary")),
    )(qry, pts_t)

    neighbors_index = idx[:q, :k].reshape(-1).astype(index_dtype)
    # Exclusive prefix sum of per-query neighbor counts (= k each since N >= k),
    # int64 like torch.LongTensor.  Host-side glue.
    neighbors_row_splits = np.arange(q + 1, dtype=np.int64) * k
    if return_distances:
        neighbors_distance = dst[:q, :k].reshape(-1)
    else:
        neighbors_distance = jnp.zeros((0,), jnp.float32)
    return neighbors_index, neighbors_row_splits, neighbors_distance


def _check(points, queries, k, nbr_idx, nbr_dist, row_splits):
    p = np.asarray(points)
    qr = np.asarray(queries)
    q = qr.shape[0]
    d = np.sum((qr[:, None, :] - p[None, :, :]) ** 2, axis=-1)
    ref = np.sort(d, axis=1)[:, :k]
    got = np.asarray(nbr_dist).reshape(q, k)
    assert np.allclose(got, ref, atol=1e-4), "distance mismatch vs reference"
    gathered = np.sum(
        (qr[:, None, :] - p[np.asarray(nbr_idx).reshape(q, k)]) ** 2, axis=-1)
    assert np.allclose(gathered, got, atol=1e-4), "index/distance inconsistency"
    assert np.all(np.diff(got, axis=1) >= -1e-6), "distances not ascending"
    assert row_splits.dtype == np.int64 and row_splits[-1] == q * k


if __name__ == "__main__":
    key = jax.random.PRNGKey(0)

    # Config 1: tiny (matches the module docstring example).
    kp_, kq_ = jax.random.split(key)
    N, Q, K = 20, 10, 8
    points = jax.random.normal(kp_, (N, 3), dtype=jnp.float32)
    queries = jax.random.normal(kq_, (Q, 3), dtype=jnp.float32)
    nbr_idx, row_splits, nbr_dist = knn_search(points, queries, K,
                                               metric="L2", return_distances=True)
    nbr_idx, nbr_dist = jax.block_until_ready((nbr_idx, nbr_dist))
    _check(points, queries, K, nbr_idx, nbr_dist, row_splits)

    # Config 1b: L1 metric on the same data (exercises the abs distance path).
    idx_l1, _, dist_l1 = knn_search(points, queries, K, metric="L1",
                                    return_distances=True)
    idx_l1, dist_l1 = jax.block_until_ready((idx_l1, dist_l1))
    d_l1 = np.sum(np.abs(np.asarray(queries)[:, None, :] -
                         np.asarray(points)[None, :, :]), axis=-1)
    ref_l1 = np.sort(d_l1, axis=1)[:, :K]
    assert np.allclose(np.asarray(dist_l1).reshape(Q, K), ref_l1, atol=1e-4), \
        "L1 distance mismatch"

    # Config 2: multiple query tiles AND multiple point tiles (exercises the
    # running top-k fold across the inner 'arbitrary' point-tile grid axis).
    kp2, kq2 = jax.random.split(jax.random.PRNGKey(1))
    N2, Q2, K2 = 300, 40, 8
    points2 = jax.random.normal(kp2, (N2, 3), dtype=jnp.float32)
    queries2 = jax.random.normal(kq2, (Q2, 3), dtype=jnp.float32)
    idx2, rs2, dist2 = knn_search(points2, queries2, K2, return_distances=True,
                                  tq=16, tp=128)
    idx2, dist2 = jax.block_until_ready((idx2, dist2))
    _check(points2, queries2, K2, idx2, dist2, rs2)

    # Config 3: ignore_query_point with queries taken from the point cloud itself.
    Q3, K3 = 12, 4
    queries3 = points2[:Q3]
    idx3, _, dist3 = knn_search(points2, queries3, K3, ignore_query_point=True,
                                return_distances=True, tp=128)
    idx3, dist3 = jax.block_until_ready((idx3, dist3))
    p3 = np.asarray(points2)
    q3 = np.asarray(queries3)
    d3 = np.sum((q3[:, None, :] - p3[None, :, :]) ** 2, axis=-1)
    d3[np.arange(Q3), np.arange(Q3)] = np.inf          # coincident point excluded
    ref3 = np.sort(d3, axis=1)[:, :K3]
    got3 = np.asarray(dist3).reshape(Q3, K3)
    assert np.allclose(got3, ref3, atol=1e-4), "ignore_query_point distance mismatch"
    assert not np.any(np.asarray(idx3).reshape(Q3, K3) == np.arange(Q3)[:, None]), \
        "query point was not ignored"

    print("KERNEL_OK")
</pallas_src>

<mosaic_0001>
module attributes {stable_mosaic.version = 11 : i64} {
  func.func @_knn_kernel(%arg0: i32, %arg1: i32, %arg2: memref<8x3xf32, #tpu.memory_space<vmem>>, %arg3: memref<8x128xf32, #tpu.memory_space<vmem>>, %arg4: memref<8x128xi32, #tpu.memory_space<vmem>>, %arg5: memref<8x128xf32, #tpu.memory_space<vmem>>, %arg6: memref<8x128xf32, #tpu.memory_space<vmem>>, %arg7: memref<8x8xf32, #tpu.memory_space<vmem>>, %arg8: memref<8x8xi32, #tpu.memory_space<vmem>>) attributes {dimension_semantics = [#tpu.dimension_semantics<parallel>, #tpu.dimension_semantics<arbitrary>], iteration_bounds = array<i64: 2, 1>, scalar_prefetch = 0 : i64, scratch_operands = 3 : i64, tpu.core_type = #tpu.core_type<tc>, window_params = [{transform_indices = @transform_0, window_bounds = array<i64: 8, 3>}, {transform_indices = @transform_1, window_bounds = array<i64: 8, 128>}, {transform_indices = @transform_2, window_bounds = array<i64: 8, 128>}, {transform_indices = @transform_3, window_bounds = array<i64: 8, 128>}]} {
    %c0_i32 = arith.constant 0 : i32
    %0 = arith.cmpi eq, %arg1, %c0_i32 : i32
    %1 = arith.extui %0 : i1 to i32
    %cst = arith.constant 0x7F800000 : f32
    %c0_i32_0 = arith.constant 0 : i32
    %2 = arith.cmpi ne, %1, %c0_i32_0 : i32
    scf.if %2 {
      %386 = vector.broadcast %cst : f32 to vector<8x8xf32>
      %c0_132 = arith.constant 0 : index
      %c0_133 = arith.constant 0 : index
      %387 = vector.load %arg7[%c0_132, %c0_133] : memref<8x8xf32, #tpu.memory_space<vmem>>, vector<8x8xf32>
      tpu.vector_store %arg7[%c0_132, %c0_133], %386 {strides = array<i32>} : memref<8x8xf32, #tpu.memory_space<vmem>>, vector<8x8xf32>,
      %c0_i32_134 = arith.constant 0 : i32
      %388 = vector.broadcast %c0_i32_134 : i32 to vector<8x8xi32>
      %c0_135 = arith.constant 0 : index
      %c0_136 = arith.constant 0 : index
      %389 = vector.load %arg8[%c0_135, %c0_136] : memref<8x8xi32, #tpu.memory_space<vmem>>, vector<8x8xi32>
      tpu.vector_store %arg8[%c0_135, %c0_136], %388 {strides = array<i32>} : memref<8x8xi32, #tpu.memory_space<vmem>>, vector<8x8xi32>,
    } else {
    }
    %c0 = arith.constant 0 : index
    %c0_1 = arith.constant 0 : index
    %3 = vector.load %arg2[%c0, %c0_1] : memref<8x3xf32, #tpu.memory_space<vmem>>, vector<8x3xf32>
    %4 = vector.extract_strided_slice %3 {offsets = [0, 0], sizes = [8, 1], strides = [1, 1]} : vector<8x3xf32> to vector<8x1xf32>
    %5 = vector.extract_strided_slice %3 {offsets = [0, 1], sizes = [8, 1], strides = [1, 1]} : vector<8x3xf32> to vector<8x1xf32>
    %6 = vector.extract_strided_slice %3 {offsets = [0, 2], sizes = [8, 1], strides = [1, 1]} : vector<8x3xf32> to vector<8x1xf32>
    %7 = tpu.iota {dimensions = array<i32: 1>} : vector<8x128xi32>
    %8 = tpu.iota {dimensions = array<i32: 1>} : vector<8x8xi32>
    %c128_i32 = arith.constant 128 : i32
    %9 = arith.muli %arg1, %c128_i32 : i32
    %c0_2 = arith.constant 0 : index
    %c0_3 = arith.constant 0 : index
    %10 = vector.load %arg7[%c0_2, %c0_3] : memref<8x8xf32, #tpu.memory_space<vmem>>, vector<8x8xf32>
    %c0_4 = arith.constant 0 : index
    %c0_5 = arith.constant 0 : index
    %11 = vector.load %arg8[%c0_4, %c0_5] : memref<8x8xi32, #tpu.memory_space<vmem>>, vector<8x8xi32>
    %cst_6 = arith.constant 0x7F800000 : f32
    %12 = vector.broadcast %cst_6 : f32 to vector<8x8xf32>
    %c0_i32_7 = arith.constant 0 : i32
    %13 = vector.broadcast %c0_i32_7 : i32 to vector<8x8xi32>
    %cst_8 = arith.constant 0x7F800000 : f32
    %14 = vector.broadcast %cst_8 : f32 to vector<8x128xf32>
    %c0_i32_9 = arith.constant 0 : i32
    %15 = vector.broadcast %c0_i32_9 : i32 to vector<8x128xi32>
    %c0_i32_10 = arith.constant 0 : i32
    %16 = arith.addi %9, %c0_i32_10 : i32
    %17 = vector.broadcast %16 : i32 to vector<8x128xi32>
    %18 = arith.addi %7, %17 : vector<8x128xi32>
    %c0_11 = arith.constant 0 : index
    %c0_12 = arith.constant 0 : index
    %19 = vector.load %arg3[%c0_11, %c0_12] : memref<8x128xf32, #tpu.memory_space<vmem>>, vector<1x128xf32>
    %c1 = arith.constant 1 : index
    %c0_13 = arith.constant 0 : index
    %20 = vector.load %arg3[%c1, %c0_13] : memref<8x128xf32, #tpu.memory_space<vmem>>, vector<1x128xf32>
    %c2 = arith.constant 2 : index
    %c0_14 = arith.constant 0 : index
    %21 = vector.load %arg3[%c2, %c0_14] : memref<8x128xf32, #tpu.memory_space<vmem>>, vector<1x128xf32>
    %22 = vector.broadcast %4 : vector<8x1xf32> to vector<8x128xf32>
    %23 = vector.broadcast %19 : vector<1x128xf32> to vector<8x128xf32>
    %24 = arith.subf %22, %23 : vector<8x128xf32>
    %25 = vector.broadcast %5 : vector<8x1xf32> to vector<8x128xf32>
    %26 = vector.broadcast %20 : vector<1x128xf32> to vector<8x128xf32>
    %27 = arith.subf %25, %26 : vector<8x128xf32>
    %28 = vector.broadcast %6 : vector<8x1xf32> to vector<8x128xf32>
    %29 = vector.broadcast %21 : vector<1x128xf32> to vector<8x128xf32>
    %30 = arith.subf %28, %29 : vector<8x128xf32>
    %31 = arith.mulf %24, %24 : vector<8x128xf32>
    %32 = arith.mulf %27, %27 : vector<8x128xf32>
    %33 = arith.addf %31, %32 : vector<8x128xf32>
    %34 = arith.mulf %30, %30 : vector<8x128xf32>
    %35 = arith.addf %33, %34 : vector<8x128xf32>
    %c0_15 = arith.constant 0 : index
    %c0_16 = arith.constant 0 : index
    %36 = vector.load %arg6[%c0_15, %c0_16] : memref<8x128xf32, #tpu.memory_space<vmem>>, vector<8x128xf32>
    tpu.vector_store %arg6[%c0_15, %c0_16], %35 {strides = array<i32>} : memref<8x128xf32, #tpu.memory_space<vmem>>, vector<8x128xf32>,
    %37 = arith.cmpf olt, %35, %14 : vector<8x128xf32>
    %38 = arith.select %37, %35, %14 : vector<8x128xi1>, vector<8x128xf32>
    %39 = arith.select %37, %18, %15 : vector<8x128xi1>, vector<8x128xi32>
    %cst_17 = arith.constant dense<0x7F800000> : vector<8xf32>
    %40 = vector.multi_reduction <minimumf>, %38, %cst_17 [1] : vector<8x128xf32> to vector<8xf32>
    %41 = vector.shape_cast %40 : vector<8xf32> to vector<8x1xf32>
    %42 = vector.broadcast %41 : vector<8x1xf32> to vector<8x128xf32>
    %43 = arith.cmpf ole, %38, %42 : vector<8x128xf32>
    %c1073741824_i32 = arith.constant 1073741824 : i32
    %44 = vector.broadcast %c1073741824_i32 : i32 to vector<8x128xi32>
    %45 = arith.select %43, %39, %44 : vector<8x128xi1>, vector<8x128xi32>
    %cst_18 = arith.constant dense<2147483647> : vector<8xi32>
    %46 = vector.multi_reduction <minsi>, %45, %cst_18 [1] : vector<8x128xi32> to vector<8xi32>
    %47 = vector.shape_cast %46 : vector<8xi32> to vector<8x1xi32>
    %cst_19 = arith.constant dense<0x7F800000> : vector<8xf32>
    %48 = vector.multi_reduction <minimumf>, %10, %cst_19 [1] : vector<8x8xf32> to vector<8xf32>
    %49 = vector.shape_cast %48 : vector<8xf32> to vector<8x1xf32>
    %50 = vector.broadcast %49 : vector<8x1xf32> to vector<8x8xf32>
    %51 = arith.cmpf ole, %10, %50 : vector<8x8xf32>
    %c1073741824_i32_20 = arith.constant 1073741824 : i32
    %52 = vector.broadcast %c1073741824_i32_20 : i32 to vector<8x8xi32>
    %53 = arith.select %51, %11, %52 : vector<8x8xi1>, vector<8x8xi32>
    %cst_21 = arith.constant dense<2147483647> : vector<8xi32>
    %54 = vector.multi_reduction <minsi>, %53, %cst_21 [1] : vector<8x8xi32> to vector<8xi32>
    %55 = vector.shape_cast %54 : vector<8xi32> to vector<8x1xi32>
    %56 = arith.cmpf ole, %49, %41 : vector<8x1xf32>
    %57 = arith.select %56, %49, %41 : vector<8x1xi1>, vector<8x1xf32>
    %58 = arith.select %56, %55, %47 : vector<8x1xi1>, vector<8x1xi32>
    %59 = vector.broadcast %58 : vector<8x1xi32> to vector<8x8xi32>
    %60 = arith.cmpi eq, %11, %59 : vector<8x8xi32>
    %cst_22 = arith.constant 0x7F800000 : f32
    %61 = vector.broadcast %cst_22 : f32 to vector<8x8xf32>
    %62 = arith.select %60, %61, %10 : vector<8x8xi1>, vector<8x8xf32>
    %c0_i32_23 = arith.constant 0 : i32
    %63 = vector.broadcast %c0_i32_23 : i32 to vector<8x8xi32>
    %64 = arith.cmpi eq, %8, %63 : vector<8x8xi32>
    %65 = vector.shape_cast %57 : vector<8x1xf32> to vector<8x1xf32>
    %66 = vector.broadcast %65 : vector<8x1xf32> to vector<8x8xf32>
    %67 = arith.select %64, %66, %12 : vector<8x8xi1>, vector<8x8xf32>
    %68 = vector.shape_cast %58 : vector<8x1xi32> to vector<8x1xi32>
    %69 = vector.broadcast %68 : vector<8x1xi32> to vector<8x8xi32>
    %70 = arith.select %64, %69, %13 : vector<8x8xi1>, vector<8x8xi32>
    %cst_24 = arith.constant 0x7F800000 : f32
    %71 = vector.broadcast %cst_24 : f32 to vector<8x128xf32>
    %c0_i32_25 = arith.constant 0 : i32
    %72 = vector.broadcast %c0_i32_25 : i32 to vector<8x128xi32>
    %c0_i32_26 = arith.constant 0 : i32
    %73 = arith.addi %9, %c0_i32_26 : i32
    %74 = vector.broadcast %73 : i32 to vector<8x128xi32>
    %75 = arith.addi %7, %74 : vector<8x128xi32>
    %c0_27 = arith.constant 0 : index
    %c0_28 = arith.constant 0 : index
    %76 = vector.load %arg6[%c0_27, %c0_28] : memref<8x128xf32, #tpu.memory_space<vmem>>, vector<8x128xf32>
    %77 = vector.broadcast %58 : vector<8x1xi32> to vector<8x128xi32>
    %78 = arith.cmpi eq, %75, %77 : vector<8x128xi32>
    %cst_29 = arith.constant 0x7F800000 : f32
    %79 = vector.broadcast %cst_29 : f32 to vector<8x128xf32>
    %80 = arith.select %78, %79, %76 : vector<8x128xi1>, vector<8x128xf32>
    %c0_30 = arith.constant 0 : index
    %c0_31 = arith.constant 0 : index
    %81 = vector.load %arg6[%c0_30, %c0_31] : memref<8x128xf32, #tpu.memory_space<vmem>>, vector<8x128xf32>
    tpu.vector_store %arg6[%c0_30, %c0_31], %80 {strides = array<i32>} : memref<8x128xf32, #tpu.memory_space<vmem>>, vector<8x128xf32>,
    %82 = arith.cmpf olt, %80, %71 : vector<8x128xf32>
    %83 = arith.select %82, %80, %71 : vector<8x128xi1>, vector<8x128xf32>
    %84 = arith.select %82, %75, %72 : vector<8x128xi1>, vector<8x128xi32>
    %cst_32 = arith.constant dense<0x7F800000> : vector<8xf32>
    %85 = vector.multi_reduction <minimumf>, %83, %cst_32 [1] : vector<8x128xf32> to vector<8xf32>
    %86 = vector.shape_cast %85 : vector<8xf32> to vector<8x1xf32>
    %87 = vector.broadcast %86 : vector<8x1xf32> to vector<8x128xf32>
    %88 = arith.cmpf ole, %83, %87 : vector<8x128xf32>
    %c1073741824_i32_33 = arith.constant 1073741824 : i32
    %89 = vector.broadcast %c1073741824_i32_33 : i32 to vector<8x128xi32>
    %90 = arith.select %88, %84, %89 : vector<8x128xi1>, vector<8x128xi32>
    %cst_34 = arith.constant dense<2147483647> : vector<8xi32>
    %91 = vector.multi_reduction <minsi>, %90, %cst_34 [1] : vector<8x128xi32> to vector<8xi32>
    %92 = vector.shape_cast %91 : vector<8xi32> to vector<8x1xi32>
    %cst_35 = arith.constant dense<0x7F800000> : vector<8xf32>
    %93 = vector.multi_reduction <minimumf>, %62, %cst_35 [1] : vector<8x8xf32> to vector<8xf32>
    %94 = vector.shape_cast %93 : vector<8xf32> to vector<8x1xf32>
    %95 = vector.broadcast %94 : vector<8x1xf32> to vector<8x8xf32>
    %96 = arith.cmpf ole, %62, %95 : vector<8x8xf32>
    %c1073741824_i32_36 = arith.constant 1073741824 : i32
    %97 = vector.broadcast %c1073741824_i32_36 : i32 to vector<8x8xi32>
    %98 = arith.select %96, %11, %97 : vector<8x8xi1>, vector<8x8xi32>
    %cst_37 = arith.constant dense<2147483647> : vector<8xi32>
    %99 = vector.multi_reduction <minsi>, %98, %cst_37 [1] : vector<8x8xi32> to vector<8xi32>
    %100 = vector.shape_cast %99 : vector<8xi32> to vector<8x1xi32>
    %101 = arith.cmpf ole, %94, %86 : vector<8x1xf32>
    %102 = arith.select %101, %94, %86 : vector<8x1xi1>, vector<8x1xf32>
    %103 = arith.select %101, %100, %92 : vector<8x1xi1>, vector<8x1xi32>
    %104 = vector.broadcast %103 : vector<8x1xi32> to vector<8x8xi32>
    %105 = arith.cmpi eq, %11, %104 : vector<8x8xi32>
    %cst_38 = arith.constant 0x7F800000 : f32
    %106 = vector.broadcast %cst_38 : f32 to vector<8x8xf32>
    %107 = arith.select %105, %106, %62 : vector<8x8xi1>, vector<8x8xf32>
    %c1_i32 = arith.constant 1 : i32
    %108 = vector.broadcast %c1_i32 : i32 to vector<8x8xi32>
    %109 = arith.cmpi eq, %8, %108 : vector<8x8xi32>
    %110 = vector.shape_cast %102 : vector<8x1xf32> to vector<8x1xf32>
    %111 = vector.broadcast %110 : vector<8x1xf32> to vector<8x8xf32>
    %112 = arith.select %109, %111, %67 : vector<8x8xi1>, vector<8x8xf32>
    %113 = vector.shape_cast %103 : vector<8x1xi32> to vector<8x1xi32>
    %114 = vector.broadcast %113 : vector<8x1xi32> to vector<8x8xi32>
    %115 = arith.select %109, %114, %70 : vector<8x8xi1>, vector<8x8xi32>
    %cst_39 = arith.constant 0x7F800000 : f32
    %116 = vector.broadcast %cst_39 : f32 to vector<8x128xf32>
    %c0_i32_40 = arith.constant 0 : i32
    %117 = vector.broadcast %c0_i32_40 : i32 to vector<8x128xi32>
    %c0_i32_41 = arith.constant 0 : i32
    %118 = arith.addi %9, %c0_i32_41 : i32
    %119 = vector.broadcast %118 : i32 to vector<8x128xi32>
    %120 = arith.addi %7, %119 : vector<8x128xi32>
    %c0_42 = arith.constant 0 : index
    %c0_43 = arith.constant 0 : index
    %121 = vector.load %arg6[%c0_42, %c0_43] : memref<8x128xf32, #tpu.memory_space<vmem>>, vector<8x128xf32>
    %122 = vector.broadcast %103 : vector<8x1xi32> to vector<8x128xi32>
    %123 = arith.cmpi eq, %120, %122 : vector<8x128xi32>
    %cst_44 = arith.constant 0x7F800000 : f32
    %124 = vector.broadcast %cst_44 : f32 to vector<8x128xf32>
    %125 = arith.select %123, %124, %121 : vector<8x128xi1>, vector<8x128xf32>
    %c0_45 = arith.constant 0 : index
    %c0_46 = arith.constant 0 : index
    %126 = vector.load %arg6[%c0_45, %c0_46] : memref<8x128xf32, #tpu.memory_space<vmem>>, vector<8x128xf32>
    tpu.vector_store %arg6[%c0_45, %c0_46], %125 {strides = array<i32>} : memref<8x128xf32, #tpu.memory_space<vmem>>, vector<8x128xf32>,
    %127 = arith.cmpf olt, %125, %116 : vector<8x128xf32>
    %128 = arith.select %127, %125, %116 : vector<8x128xi1>, vector<8x128xf32>
    %129 = arith.select %127, %120, %117 : vector<8x128xi1>, vector<8x128xi32>
    %cst_47 = arith.constant dense<0x7F800000> : vector<8xf32>
    %130 = vector.multi_reduction <minimumf>, %128, %cst_47 [1] : vector<8x128xf32> to vector<8xf32>
    %131 = vector.shape_cast %130 : vector<8xf32> to vector<8x1xf32>
    %132 = vector.broadcast %131 : vector<8x1xf32> to vector<8x128xf32>
    %133 = arith.cmpf ole, %128, %132 : vector<8x128xf32>
    %c1073741824_i32_48 = arith.constant 1073741824 : i32
    %134 = vector.broadcast %c1073741824_i32_48 : i32 to vector<8x128xi32>
    %135 = arith.select %133, %129, %134 : vector<8x128xi1>, vector<8x128xi32>
    %cst_49 = arith.constant dense<2147483647> : vector<8xi32>
    %136 = vector.multi_reduction <minsi>, %135, %cst_49 [1] : vector<8x128xi32> to vector<8xi32>
    %137 = vector.shape_cast %136 : vector<8xi32> to vector<8x1xi32>
    %cst_50 = arith.constant dense<0x7F800000> : vector<8xf32>
    %138 = vector.multi_reduction <minimumf>, %107, %cst_50 [1] : vector<8x8xf32> to vector<8xf32>
    %139 = vector.shape_cast %138 : vector<8xf32> to vector<8x1xf32>
    %140 = vector.broadcast %139 : vector<8x1xf32> to vector<8x8xf32>
    %141 = arith.cmpf ole, %107, %140 : vector<8x8xf32>
    %c1073741824_i32_51 = arith.constant 1073741824 : i32
    %142 = vector.broadcast %c1073741824_i32_51 : i32 to vector<8x8xi32>
    %143 = arith.select %141, %11, %142 : vector<8x8xi1>, vector<8x8xi32>
    %cst_52 = arith.constant dense<2147483647> : vector<8xi32>
    %144 = vector.multi_reduction <minsi>, %143, %cst_52 [1] : vector<8x8xi32> to vector<8xi32>
    %145 = vector.shape_cast %144 : vector<8xi32> to vector<8x1xi32>
    %146 = arith.cmpf ole, %139, %131 : vector<8x1xf32>
    %147 = arith.select %146, %139, %131 : vector<8x1xi1>, vector<8x1xf32>
    %148 = arith.select %146, %145, %137 : vector<8x1xi1>, vector<8x1xi32>
    %149 = vector.broadcast %148 : vector<8x1xi32> to vector<8x8xi32>
    %150 = arith.cmpi eq, %11, %149 : vector<8x8xi32>
    %cst_53 = arith.constant 0x7F800000 : f32
    %151 = vector.broadcast %cst_53 : f32 to vector<8x8xf32>
    %152 = arith.select %150, %151, %107 : vector<8x8xi1>, vector<8x8xf32>
    %c2_i32 = arith.constant 2 : i32
    %153 = vector.broadcast %c2_i32 : i32 to vector<8x8xi32>
    %154 = arith.cmpi eq, %8, %153 : vector<8x8xi32>
    %155 = vector.shape_cast %147 : vector<8x1xf32> to vector<8x1xf32>
    %156 = vector.broadcast %155 : vector<8x1xf32> to vector<8x8xf32>
    %157 = arith.select %154, %156, %112 : vector<8x8xi1>, vector<8x8xf32>
    %158 = vector.shape_cast %148 : vector<8x1xi32> to vector<8x1xi32>
    %159 = vector.broadcast %158 : vector<8x1xi32> to vector<8x8xi32>
    %160 = arith.select %154, %159, %115 : vector<8x8xi1>, vector<8x8xi32>
    %cst_54 = arith.constant 0x7F800000 : f32
    %161 = vector.broadcast %cst_54 : f32 to vector<8x128xf32>
    %c0_i32_55 = arith.constant 0 : i32
    %162 = vector.broadcast %c0_i32_55 : i32 to vector<8x128xi32>
    %c0_i32_56 = arith.constant 0 : i32
    %163 = arith.addi %9, %c0_i32_56 : i32
    %164 = vector.broadcast %163 : i32 to vector<8x128xi32>
    %165 = arith.addi %7, %164 : vector<8x128xi32>
    %c0_57 = arith.constant 0 : index
    %c0_58 = arith.constant 0 : index
    %166 = vector.load %arg6[%c0_57, %c0_58] : memref<8x128xf32, #tpu.memory_space<vmem>>, vector<8x128xf32>
    %167 = vector.broadcast %148 : vector<8x1xi32> to vector<8x128xi32>
    %168 = arith.cmpi eq, %165, %167 : vector<8x128xi32>
    %cst_59 = arith.constant 0x7F800000 : f32
    %169 = vector.broadcast %cst_59 : f32 to vector<8x128xf32>
    %170 = arith.select %168, %169, %166 : vector<8x128xi1>, vector<8x128xf32>
    %c0_60 = arith.constant 0 : index
    %c0_61 = arith.constant 0 : index
    %171 = vector.load %arg6[%c0_60, %c0_61] : memref<8x128xf32, #tpu.memory_space<vmem>>, vector<8x128xf32>
    tpu.vector_store %arg6[%c0_60, %c0_61], %170 {strides = array<i32>} : memref<8x128xf32, #tpu.memory_space<vmem>>, vector<8x128xf32>,
    %172 = arith.cmpf olt, %170, %161 : vector<8x128xf32>
    %173 = arith.select %172, %170, %161 : vector<8x128xi1>, vector<8x128xf32>
    %174 = arith.select %172, %165, %162 : vector<8x128xi1>, vector<8x128xi32>
    %cst_62 = arith.constant dense<0x7F800000> : vector<8xf32>
    %175 = vector.multi_reduction <minimumf>, %173, %cst_62 [1] : vector<8x128xf32> to vector<8xf32>
    %176 = vector.shape_cast %175 : vector<8xf32> to vector<8x1xf32>
    %177 = vector.broadcast %176 : vector<8x1xf32> to vector<8x128xf32>
    %178 = arith.cmpf ole, %173, %177 : vector<8x128xf32>
    %c1073741824_i32_63 = arith.constant 1073741824 : i32
    %179 = vector.broadcast %c1073741824_i32_63 : i32 to vector<8x128xi32>
    %180 = arith.select %178, %174, %179 : vector<8x128xi1>, vector<8x128xi32>
    %cst_64 = arith.constant dense<2147483647> : vector<8xi32>
    %181 = vector.multi_reduction <minsi>, %180, %cst_64 [1] : vector<8x128xi32> to vector<8xi32>
    %182 = vector.shape_cast %181 : vector<8xi32> to vector<8x1xi32>
    %cst_65 = arith.constant dense<0x7F800000> : vector<8xf32>
    %183 = vector.multi_reduction <minimumf>, %152, %cst_65 [1] : vector<8x8xf32> to vector<8xf32>
    %184 = vector.shape_cast %183 : vector<8xf32> to vector<8x1xf32>
    %185 = vector.broadcast %184 : vector<8x1xf32> to vector<8x8xf32>
    %186 = arith.cmpf ole, %152, %185 : vector<8x8xf32>
    %c1073741824_i32_66 = arith.constant 1073741824 : i32
    %187 = vector.broadcast %c1073741824_i32_66 : i32 to vector<8x8xi32>
    %188 = arith.select %186, %11, %187 : vector<8x8xi1>, vector<8x8xi32>
    %cst_67 = arith.constant dense<2147483647> : vector<8xi32>
    %189 = vector.multi_reduction <minsi>, %188, %cst_67 [1] : vector<8x8xi32> to vector<8xi32>
    %190 = vector.shape_cast %189 : vector<8xi32> to vector<8x1xi32>
    %191 = arith.cmpf ole, %184, %176 : vector<8x1xf32>
    %192 = arith.select %191, %184, %176 : vector<8x1xi1>, vector<8x1xf32>
    %193 = arith.select %191, %190, %182 : vector<8x1xi1>, vector<8x1xi32>
    %194 = vector.broadcast %193 : vector<8x1xi32> to vector<8x8xi32>
    %195 = arith.cmpi eq, %11, %194 : vector<8x8xi32>
    %cst_68 = arith.constant 0x7F800000 : f32
    %196 = vector.broadcast %cst_68 : f32 to vector<8x8xf32>
    %197 = arith.select %195, %196, %152 : vector<8x8xi1>, vector<8x8xf32>
    %c3_i32 = arith.constant 3 : i32
    %198 = vector.broadcast %c3_i32 : i32 to vector<8x8xi32>
    %199 = arith.cmpi eq, %8, %198 : vector<8x8xi32>
    %200 = vector.shape_cast %192 : vector<8x1xf32> to vector<8x1xf32>
    %201 = vector.broadcast %200 : vector<8x1xf32> to vector<8x8xf32>
    %202 = arith.select %199, %201, %157 : vector<8x8xi1>, vector<8x8xf32>
    %203 = vector.shape_cast %193 : vector<8x1xi32> to vector<8x1xi32>
    %204 = vector.broadcast %203 : vector<8x1xi32> to vector<8x8xi32>
    %205 = arith.select %199, %204, %160 : vector<8x8xi1>, vector<8x8xi32>
    %cst_69 = arith.constant 0x7F800000 : f32
    %206 = vector.broadcast %cst_69 : f32 to vector<8x128xf32>
    %c0_i32_70 = arith.constant 0 : i32
    %207 = vector.broadcast %c0_i32_70 : i32 to vector<8x128xi32>
    %c0_i32_71 = arith.constant 0 : i32
    %208 = arith.addi %9, %c0_i32_71 : i32
    %209 = vector.broadcast %208 : i32 to vector<8x128xi32>
    %210 = arith.addi %7, %209 : vector<8x128xi32>
    %c0_72 = arith.constant 0 : index
    %c0_73 = arith.constant 0 : index
    %211 = vector.load %arg6[%c0_72, %c0_73] : memref<8x128xf32, #tpu.memory_space<vmem>>, vector<8x128xf32>
    %212 = vector.broadcast %193 : vector<8x1xi32> to vector<8x128xi32>
    %213 = arith.cmpi eq, %210, %212 : vector<8x128xi32>
    %cst_74 = arith.constant 0x7F800000 : f32
    %214 = vector.broadcast %cst_74 : f32 to vector<8x128xf32>
    %215 = arith.select %213, %214, %211 : vector<8x128xi1>, vector<8x128xf32>
    %c0_75 = arith.constant 0 : index
    %c0_76 = arith.constant 0 : index
    %216 = vector.load %arg6[%c0_75, %c0_76] : memref<8x128xf32, #tpu.memory_space<vmem>>, vector<8x128xf32>
    tpu.vector_store %arg6[%c0_75, %c0_76], %215 {strides = array<i32>} : memref<8x128xf32, #tpu.memory_space<vmem>>, vector<8x128xf32>,
    %217 = arith.cmpf olt, %215, %206 : vector<8x128xf32>
    %218 = arith.select %217, %215, %206 : vector<8x128xi1>, vector<8x128xf32>
    %219 = arith.select %217, %210, %207 : vector<8x128xi1>, vector<8x128xi32>
    %cst_77 = arith.constant dense<0x7F800000> : vector<8xf32>
    %220 = vector.multi_reduction <minimumf>, %218, %cst_77 [1] : vector<8x128xf32> to vector<8xf32>
    %221 = vector.shape_cast %220 : vector<8xf32> to vector<8x1xf32>
    %222 = vector.broadcast %221 : vector<8x1xf32> to vector<8x128xf32>
    %223 = arith.cmpf ole, %218, %222 : vector<8x128xf32>
    %c1073741824_i32_78 = arith.constant 1073741824 : i32
    %224 = vector.broadcast %c1073741824_i32_78 : i32 to vector<8x128xi32>
    %225 = arith.select %223, %219, %224 : vector<8x128xi1>, vector<8x128xi32>
    %cst_79 = arith.constant dense<2147483647> : vector<8xi32>
    %226 = vector.multi_reduction <minsi>, %225, %cst_79 [1] : vector<8x128xi32> to vector<8xi32>
    %227 = vector.shape_cast %226 : vector<8xi32> to vector<8x1xi32>
    %cst_80 = arith.constant dense<0x7F800000> : vector<8xf32>
    %228 = vector.multi_reduction <minimumf>, %197, %cst_80 [1] : vector<8x8xf32> to vector<8xf32>
    %229 = vector.shape_cast %228 : vector<8xf32> to vector<8x1xf32>
    %230 = vector.broadcast %229 : vector<8x1xf32> to vector<8x8xf32>
    %231 = arith.cmpf ole, %197, %230 : vector<8x8xf32>
    %c1073741824_i32_81 = arith.constant 1073741824 : i32
    %232 = vector.broadcast %c1073741824_i32_81 : i32 to vector<8x8xi32>
    %233 = arith.select %231, %11, %232 : vector<8x8xi1>, vector<8x8xi32>
    %cst_82 = arith.constant dense<2147483647> : vector<8xi32>
    %234 = vector.multi_reduction <minsi>, %233, %cst_82 [1] : vector<8x8xi32> to vector<8xi32>
    %235 = vector.shape_cast %234 : vector<8xi32> to vector<8x1xi32>
    %236 = arith.cmpf ole, %229, %221 : vector<8x1xf32>
    %237 = arith.select %236, %229, %221 : vector<8x1xi1>, vector<8x1xf32>
    %238 = arith.select %236, %235, %227 : vector<8x1xi1>, vector<8x1xi32>
    %239 = vector.broadcast %238 : vector<8x1xi32> to vector<8x8xi32>
    %240 = arith.cmpi eq, %11, %239 : vector<8x8xi32>
    %cst_83 = arith.constant 0x7F800000 : f32
    %241 = vector.broadcast %cst_83 : f32 to vector<8x8xf32>
    %242 = arith.select %240, %241, %197 : vector<8x8xi1>, vector<8x8xf32>
    %c4_i32 = arith.constant 4 : i32
    %243 = vector.broadcast %c4_i32 : i32 to vector<8x8xi32>
    %244 = arith.cmpi eq, %8, %243 : vector<8x8xi32>
    %245 = vector.shape_cast %237 : vector<8x1xf32> to vector<8x1xf32>
    %246 = vector.broadcast %245 : vector<8x1xf32> to vector<8x8xf32>
    %247 = arith.select %244, %246, %202 : vector<8x8xi1>, vector<8x8xf32>
    %248 = vector.shape_cast %238 : vector<8x1xi32> to vector<8x1xi32>
    %249 = vector.broadcast %248 : vector<8x1xi32> to vector<8x8xi32>
    %250 = arith.select %244, %249, %205 : vector<8x8xi1>, vector<8x8xi32>
    %cst_84 = arith.constant 0x7F800000 : f32
    %251 = vector.broadcast %cst_84 : f32 to vector<8x128xf32>
    %c0_i32_85 = arith.constant 0 : i32
    %252 = vector.broadcast %c0_i32_85 : i32 to vector<8x128xi32>
    %c0_i32_86 = arith.constant 0 : i32
    %253 = arith.addi %9, %c0_i32_86 : i32
    %254 = vector.broadcast %253 : i32 to vector<8x128xi32>
    %255 = arith.addi %7, %254 : vector<8x128xi32>
    %c0_87 = arith.constant 0 : index
    %c0_88 = arith.constant 0 : index
    %256 = vector.load %arg6[%c0_87, %c0_88] : memref<8x128xf32, #tpu.memory_space<vmem>>, vector<8x128xf32>
    %257 = vector.broadcast %238 : vector<8x1xi32> to vector<8x128xi32>
    %258 = arith.cmpi eq, %255, %257 : vector<8x128xi32>
    %cst_89 = arith.constant 0x7F800000 : f32
    %259 = vector.broadcast %cst_89 : f32 to vector<8x128xf32>
    %260 = arith.select %258, %259, %256 : vector<8x128xi1>, vector<8x128xf32>
    %c0_90 = arith.constant 0 : index
    %c0_91 = arith.constant 0 : index
    %261 = vector.load %arg6[%c0_90, %c0_91] : memref<8x128xf32, #tpu.memory_space<vmem>>, vector<8x128xf32>
    tpu.vector_store %arg6[%c0_90, %c0_91], %260 {strides = array<i32>} : memref<8x128xf32, #tpu.memory_space<vmem>>, vector<8x128xf32>,
    %262 = arith.cmpf olt, %260, %251 : vector<8x128xf32>
    %263 = arith.select %262, %260, %251 : vector<8x128xi1>, vector<8x128xf32>
    %264 = arith.select %262, %255, %252 : vector<8x128xi1>, vector<8x128xi32>
    %cst_92 = arith.constant dense<0x7F800000> : vector<8xf32>
    %265 = vector.multi_reduction <minimumf>, %263, %cst_92 [1] : vector<8x128xf32> to vector<8xf32>
    %266 = vector.shape_cast %265 : vector<8xf32> to vector<8x1xf32>
    %267 = vector.broadcast %266 : vector<8x1xf32> to vector<8x128xf32>
    %268 = arith.cmpf ole, %263, %267 : vector<8x128xf32>
    %c1073741824_i32_93 = arith.constant 1073741824 : i32
    %269 = vector.broadcast %c1073741824_i32_93 : i32 to vector<8x128xi32>
    %270 = arith.select %268, %264, %269 : vector<8x128xi1>, vector<8x128xi32>
    %cst_94 = arith.constant dense<2147483647> : vector<8xi32>
    %271 = vector.multi_reduction <minsi>, %270, %cst_94 [1] : vector<8x128xi32> to vector<8xi32>
    %272 = vector.shape_cast %271 : vector<8xi32> to vector<8x1xi32>
    %cst_95 = arith.constant dense<0x7F800000> : vector<8xf32>
    %273 = vector.multi_reduction <minimumf>, %242, %cst_95 [1] : vector<8x8xf32> to vector<8xf32>
    %274 = vector.shape_cast %273 : vector<8xf32> to vector<8x1xf32>
    %275 = vector.broadcast %274 : vector<8x1xf32> to vector<8x8xf32>
    %276 = arith.cmpf ole, %242, %275 : vector<8x8xf32>
    %c1073741824_i32_96 = arith.constant 1073741824 : i32
    %277 = vector.broadcast %c1073741824_i32_96 : i32 to vector<8x8xi32>
    %278 = arith.select %276, %11, %277 : vector<8x8xi1>, vector<8x8xi32>
    %cst_97 = arith.constant dense<2147483647> : vector<8xi32>
    %279 = vector.multi_reduction <minsi>, %278, %cst_97 [1] : vector<8x8xi32> to vector<8xi32>
    %280 = vector.shape_cast %279 : vector<8xi32> to vector<8x1xi32>
    %281 = arith.cmpf ole, %274, %266 : vector<8x1xf32>
    %282 = arith.select %281, %274, %266 : vector<8x1xi1>, vector<8x1xf32>
    %283 = arith.select %281, %280, %272 : vector<8x1xi1>, vector<8x1xi32>
    %284 = vector.broadcast %283 : vector<8x1xi32> to vector<8x8xi32>
    %285 = arith.cmpi eq, %11, %284 : vector<8x8xi32>
    %cst_98 = arith.constant 0x7F800000 : f32
    %286 = vector.broadcast %cst_98 : f32 to vector<8x8xf32>
    %287 = arith.select %285, %286, %242 : vector<8x8xi1>, vector<8x8xf32>
    %c5_i32 = arith.constant 5 : i32
    %288 = vector.broadcast %c5_i32 : i32 to vector<8x8xi32>
    %289 = arith.cmpi eq, %8, %288 : vector<8x8xi32>
    %290 = vector.shape_cast %282 : vector<8x1xf32> to vector<8x1xf32>
    %291 = vector.broadcast %290 : vector<8x1xf32> to vector<8x8xf32>
    %292 = arith.select %289, %291, %247 : vector<8x8xi1>, vector<8x8xf32>
    %293 = vector.shape_cast %283 : vector<8x1xi32> to vector<8x1xi32>
    %294 = vector.broadcast %293 : vector<8x1xi32> to vector<8x8xi32>
    %295 = arith.select %289, %294, %250 : vector<8x8xi1>, vector<8x8xi32>
    %cst_99 = arith.constant 0x7F800000 : f32
    %296 = vector.broadcast %cst_99 : f32 to vector<8x128xf32>
    %c0_i32_100 = arith.constant 0 : i32
    %297 = vector.broadcast %c0_i32_100 : i32 to vector<8x128xi32>
    %c0_i32_101 = arith.constant 0 : i32
    %298 = arith.addi %9, %c0_i32_101 : i32
    %299 = vector.broadcast %298 : i32 to vector<8x128xi32>
    %300 = arith.addi %7, %299 : vector<8x128xi32>
    %c0_102 = arith.constant 0 : index
    %c0_103 = arith.constant 0 : index
    %301 = vector.load %arg6[%c0_102, %c0_103] : memref<8x128xf32, #tpu.memory_space<vmem>>, vector<8x128xf32>
    %302 = vector.broadcast %283 : vector<8x1xi32> to vector<8x128xi32>
    %303 = arith.cmpi eq, %300, %302 : vector<8x128xi32>
    %cst_104 = arith.constant 0x7F800000 : f32
    %304 = vector.broadcast %cst_104 : f32 to vector<8x128xf32>
    %305 = arith.select %303, %304, %301 : vector<8x128xi1>, vector<8x128xf32>
    %c0_105 = arith.constant 0 : index
    %c0_106 = arith.constant 0 : index
    %306 = vector.load %arg6[%c0_105, %c0_106] : memref<8x128xf32, #tpu.memory_space<vmem>>, vector<8x128xf32>
    tpu.vector_store %arg6[%c0_105, %c0_106], %305 {strides = array<i32>} : memref<8x128xf32, #tpu.memory_space<vmem>>, vector<8x128xf32>,
    %307 = arith.cmpf olt, %305, %296 : vector<8x128xf32>
    %308 = arith.select %307, %305, %296 : vector<8x128xi1>, vector<8x128xf32>
    %309 = arith.select %307, %300, %297 : vector<8x128xi1>, vector<8x128xi32>
    %cst_107 = arith.constant dense<0x7F800000> : vector<8xf32>
    %310 = vector.multi_reduction <minimumf>, %308, %cst_107 [1] : vector<8x128xf32> to vector<8xf32>
    %311 = vector.shape_cast %310 : vector<8xf32> to vector<8x1xf32>
    %312 = vector.broadcast %311 : vector<8x1xf32> to vector<8x128xf32>
    %313 = arith.cmpf ole, %308, %312 : vector<8x128xf32>
    %c1073741824_i32_108 = arith.constant 1073741824 : i32
    %314 = vector.broadcast %c1073741824_i32_108 : i32 to vector<8x128xi32>
    %315 = arith.select %313, %309, %314 : vector<8x128xi1>, vector<8x128xi32>
    %cst_109 = arith.constant dense<2147483647> : vector<8xi32>
    %316 = vector.multi_reduction <minsi>, %315, %cst_109 [1] : vector<8x128xi32> to vector<8xi32>
    %317 = vector.shape_cast %316 : vector<8xi32> to vector<8x1xi32>
    %cst_110 = arith.constant dense<0x7F800000> : vector<8xf32>
    %318 = vector.multi_reduction <minimumf>, %287, %cst_110 [1] : vector<8x8xf32> to vector<8xf32>
    %319 = vector.shape_cast %318 : vector<8xf32> to vector<8x1xf32>
    %320 = vector.broadcast %319 : vector<8x1xf32> to vector<8x8xf32>
    %321 = arith.cmpf ole, %287, %320 : vector<8x8xf32>
    %c1073741824_i32_111 = arith.constant 1073741824 : i32
    %322 = vector.broadcast %c1073741824_i32_111 : i32 to vector<8x8xi32>
    %323 = arith.select %321, %11, %322 : vector<8x8xi1>, vector<8x8xi32>
    %cst_112 = arith.constant dense<2147483647> : vector<8xi32>
    %324 = vector.multi_reduction <minsi>, %323, %cst_112 [1] : vector<8x8xi32> to vector<8xi32>
    %325 = vector.shape_cast %324 : vector<8xi32> to vector<8x1xi32>
    %326 = arith.cmpf ole, %319, %311 : vector<8x1xf32>
    %327 = arith.select %326, %319, %311 : vector<8x1xi1>, vector<8x1xf32>
    %328 = arith.select %326, %325, %317 : vector<8x1xi1>, vector<8x1xi32>
    %329 = vector.broadcast %328 : vector<8x1xi32> to vector<8x8xi32>
    %330 = arith.cmpi eq, %11, %329 : vector<8x8xi32>
    %cst_113 = arith.constant 0x7F800000 : f32
    %331 = vector.broadcast %cst_113 : f32 to vector<8x8xf32>
    %332 = arith.select %330, %331, %287 : vector<8x8xi1>, vector<8x8xf32>
    %c6_i32 = arith.constant 6 : i32
    %333 = vector.broadcast %c6_i32 : i32 to vector<8x8xi32>
    %334 = arith.cmpi eq, %8, %333 : vector<8x8xi32>
    %335 = vector.shape_cast %327 : vector<8x1xf32> to vector<8x1xf32>
    %336 = vector.broadcast %335 : vector<8x1xf32> to vector<8x8xf32>
    %337 = arith.select %334, %336, %292 : vector<8x8xi1>, vector<8x8xf32>
    %338 = vector.shape_cast %328 : vector<8x1xi32> to vector<8x1xi32>
    %339 = vector.broadcast %338 : vector<8x1xi32> to vector<8x8xi32>
    %340 = arith.select %334, %339, %295 : vector<8x8xi1>, vector<8x8xi32>
    %cst_114 = arith.constant 0x7F800000 : f32
    %341 = vector.broadcast %cst_114 : f32 to vector<8x128xf32>
    %c0_i32_115 = arith.constant 0 : i32
    %342 = vector.broadcast %c0_i32_115 : i32 to vector<8x128xi32>
    %c0_i32_116 = arith.constant 0 : i32
    %343 = arith.addi %9, %c0_i32_116 : i32
    %344 = vector.broadcast %343 : i32 to vector<8x128xi32>
    %345 = arith.addi %7, %344 : vector<8x128xi32>
    %c0_117 = arith.constant 0 : index
    %c0_118 = arith.constant 0 : index
    %346 = vector.load %arg6[%c0_117, %c0_118] : memref<8x128xf32, #tpu.memory_space<vmem>>, vector<8x128xf32>
    %347 = vector.broadcast %328 : vector<8x1xi32> to vector<8x128xi32>
    %348 = arith.cmpi eq, %345, %347 : vector<8x128xi32>
    %cst_119 = arith.constant 0x7F800000 : f32
    %349 = vector.broadcast %cst_119 : f32 to vector<8x128xf32>
    %350 = arith.select %348, %349, %346 : vector<8x128xi1>, vector<8x128xf32>
    %351 = arith.cmpf olt, %350, %341 : vector<8x128xf32>
    %352 = arith.select %351, %350, %341 : vector<8x128xi1>, vector<8x128xf32>
    %353 = arith.select %351, %345, %342 : vector<8x128xi1>, vector<8x128xi32>
    %cst_120 = arith.constant dense<0x7F800000> : vector<8xf32>
    %354 = vector.multi_reduction <minimumf>, %352, %cst_120 [1] : vector<8x128xf32> to vector<8xf32>
    %355 = vector.shape_cast %354 : vector<8xf32> to vector<8x1xf32>
    %356 = vector.broadcast %355 : vector<8x1xf32> to vector<8x128xf32>
    %357 = arith.cmpf ole, %352, %356 : vector<8x128xf32>
    %c1073741824_i32_121 = arith.constant 1073741824 : i32
    %358 = vector.broadcast %c1073741824_i32_121 : i32 to vector<8x128xi32>
    %359 = arith.select %357, %353, %358 : vector<8x128xi1>, vector<8x128xi32>
    %cst_122 = arith.constant dense<2147483647> : vector<8xi32>
    %360 = vector.multi_reduction <minsi>, %359, %cst_122 [1] : vector<8x128xi32> to vector<8xi32>
    %361 = vector.shape_cast %360 : vector<8xi32> to vector<8x1xi32>
    %cst_123 = arith.constant dense<0x7F800000> : vector<8xf32>
    %362 = vector.multi_reduction <minimumf>, %332, %cst_123 [1] : vector<8x8xf32> to vector<8xf32>
    %363 = vector.shape_cast %362 : vector<8xf32> to vector<8x1xf32>
    %364 = vector.broadcast %363 : vector<8x1xf32> to vector<8x8xf32>
    %365 = arith.cmpf ole, %332, %364 : vector<8x8xf32>
    %c1073741824_i32_124 = arith.constant 1073741824 : i32
    %366 = vector.broadcast %c1073741824_i32_124 : i32 to vector<8x8xi32>
    %367 = arith.select %365, %11, %366 : vector<8x8xi1>, vector<8x8xi32>
    %cst_125 = arith.constant dense<2147483647> : vector<8xi32>
    %368 = vector.multi_reduction <minsi>, %367, %cst_125 [1] : vector<8x8xi32> to vector<8xi32>
    %369 = vector.shape_cast %368 : vector<8xi32> to vector<8x1xi32>
    %370 = arith.cmpf ole, %363, %355 : vector<8x1xf32>
    %371 = arith.select %370, %363, %355 : vector<8x1xi1>, vector<8x1xf32>
    %372 = arith.select %370, %369, %361 : vector<8x1xi1>, vector<8x1xi32>
    %c7_i32 = arith.constant 7 : i32
    %373 = vector.broadcast %c7_i32 : i32 to vector<8x8xi32>
    %374 = arith.cmpi eq, %8, %373 : vector<8x8xi32>
    %375 = vector.shape_cast %371 : vector<8x1xf32> to vector<8x1xf32>
    %376 = vector.broadcast %375 : vector<8x1xf32> to vector<8x8xf32>
    %377 = arith.select %374, %376, %337 : vector<8x8xi1>, vector<8x8xf32>
    %378 = vector.shape_cast %372 : vector<8x1xi32> to vector<8x1xi32>
    %379 = vector.broadcast %378 : vector<8x1xi32> to vector<8x8xi32>
    %380 = arith.select %374, %379, %340 : vector<8x8xi1>, vector<8x8xi32>
    %c0_126 = arith.constant 0 : index
    %c0_127 = arith.constant 0 : index
    %381 = vector.load %arg7[%c0_126, %c0_127] : memref<8x8xf32, #tpu.memory_space<vmem>>, vector<8x8xf32>
    tpu.vector_store %arg7[%c0_126, %c0_127], %377 {strides = array<i32>} : memref<8x8xf32, #tpu.memory_space<vmem>>, vector<8x8xf32>,
    %c0_128 = arith.constant 0 : index
    %c0_129 = arith.constant 0 : index
    %382 = vector.load %arg8[%c0_128, %c0_129] : memref<8x8xi32, #tpu.memory_space<vmem>>, vector<8x8xi32>
    tpu.vector_store %arg8[%c0_128, %c0_129], %380 {strides = array<i32>} : memref<8x8xi32, #tpu.memory_space<vmem>>, vector<8x8xi32>,
    %c0_i32_130 = arith.constant 0 : i32
    %383 = arith.cmpi eq, %arg1, %c0_i32_130 : i32
    %384 = arith.extui %383 : i1 to i32
    %c0_i32_131 = arith.constant 0 : i32
    %385 = arith.cmpi ne, %384, %c0_i32_131 : i32
    scf.if %385 {
      %c19_i32 = arith.constant 19 : i32
      %386 = vector.broadcast %c19_i32 : i32 to vector<8x8xi32>
      %387 = arith.minsi %380, %386 : vector<8x8xi32>
      %c0_i32_132 = arith.constant 0 : i32
      %388 = vector.broadcast %c0_i32_132 : i32 to vector<8x120xi32>
      %389 = tpu.concatenate %387, %388 in 1 : vector<8x8xi32>, vector<8x120xi32> -> vector<8x128xi32>
      %cst_133 = arith.constant 0.000000e+00 : f32
      %390 = vector.broadcast %cst_133 : f32 to vector<8x120xf32>
      %391 = tpu.concatenate %377, %390 in 1 : vector<8x8xf32>, vector<8x120xf32> -> vector<8x128xf32>
      %c0_134 = arith.constant 0 : index
      %c0_135 = arith.constant 0 : index
      %392 = vector.load %arg4[%c0_134, %c0_135] : memref<8x128xi32, #tpu.memory_space<vmem>>, vector<8x128xi32>
      tpu.vector_store %arg4[%c0_134, %c0_135], %389 {strides = array<i32>} : memref<8x128xi32, #tpu.memory_space<vmem>>, vector<8x128xi32>,
      %c0_136 = arith.constant 0 : index
      %c0_137 = arith.constant 0 : index
      %393 = vector.load %arg5[%c0_136, %c0_137] : memref<8x128xf32, #tpu.memory_space<vmem>>, vector<8x128xf32>
      tpu.vector_store %arg5[%c0_136, %c0_137], %391 {strides = array<i32>} : memref<8x128xf32, #tpu.memory_space<vmem>>, vector<8x128xf32>,
    } else {
    }
    return
  }
  func.func @transform_0(%arg0: i32, %arg1: i32) -> (i32, i32) {
    %c0_i32 = arith.constant 0 : i32
    %c0_i32_0 = arith.constant 0 : i32
    return %arg0, %c0_i32 : i32, i32
  }
  func.func @transform_1(%arg0: i32, %arg1: i32) -> (i32, i32) {
    %c0_i32 = arith.constant 0 : i32
    %c0_i32_0 = arith.constant 0 : i32
    return %c0_i32, %arg1 : i32, i32
  }
  func.func @transform_2(%arg0: i32, %arg1: i32) -> (i32, i32) {
    %c0_i32 = arith.constant 0 : i32
    %c0_i32_0 = arith.constant 0 : i32
    return %arg0, %c0_i32 : i32, i32
  }
  func.func @transform_3(%arg0: i32, %arg1: i32) -> (i32, i32) {
    %c0_i32 = arith.constant 0 : i32
    %c0_i32_0 = arith.constant 0 : i32
    return %arg0, %c0_i32 : i32, i32
  }
}

</mosaic_0001>

<bundles_post_ra>
// kernel: tpu_custom_call.1
= control target key start
LH: loop header
LB: loop body
LE: loop exit
PB: predicated region body
PF: predicated region fallthrough
CT: control target
= control target key end

     0   :  { %9 = vsyncpa [#allocation6], 0  ;;  %s1404_s0 = inlined_call_operand.vmem [shape: f32[16,3], index: 0, kind: input, shape index: {}]   ;;  %s1405_s1 = inlined_call_operand.vmem [shape: f32[8,128], index: 1, kind: input, shape index: {}]   ;;  %s1406_s2 = inlined_call_operand.hbm [shape: s32[16,128], index: 2, kind: output, shape index: {0}]   ;;  %s1407_s3 = inlined_call_operand.hbm [shape: f32[16,128], index: 3, kind: output, shape index: {1}]  }
   0x1   :  { %11 = vsyncpa [#allocation6 + $0x1], 0 }
   0x2   :  { %12 = vsyncpa [#allocation8], 0 }
   0x3   :  { %14 = vsyncpa [#allocation8 + $0x1], 0  ;;  %s1050_s12 = smov 0   ;;  %s1052_s13 = smov 0  }
   0x4   :  { %s1054_s14 = smov 0   ;;  %s1056_s15 = smov 0  }
   0x5   :  { %s1058_s16 = smov 0   ;;  %s1060_s17 = smov 0  }
   0x6 LB: > { %s828_s18 = sadd.s32 4294967295, %s1024_s17   ;;  %s829_s19 = sadd.s32 4294967294, %s1024_s17   ;;  %s1024_s17 = sphi %s1060_s17, %s20_s17   ;;  %s1020_s16 = sphi %s1058_s16, %s1418_s16   ;;  %s1016_s15 = sphi %s1056_s15, %s1417_s15   ;;  %s1012_s14 = sphi %s1054_s14, %s1416_s14   ;;  %s1008_s13 = sphi %s1052_s13, %s1415_s13   ;;  %s1004_s12 = sphi %s1050_s12, %s1414_s12  }
   0x7   : > { %s32_s20 = sadd.s32 1, %s1020_s16  ;;  %s91_s21 = sadd.s32 1, %s1012_s14 }
   0x8   : > { %p34_p0 = scmp.ge.s32.totalorder %s32_s20, 2  ;;  %p101_p1 = scmp.ne.s32.totalorder %s1012_s14, %s1008_s13 }
   0x9   : > { %p102_p2 = scmp.eq.s32.totalorder %s828_s18, 1  ;;  %p107_p3 = scmp.ne.s32.totalorder %s1008_s13, %s1004_s12 }
   0xa   : > { %s1420_s20 = smov (%p34_p0, %s32_s20), 0  ;;  %p108_p5 = scmp.eq.s32.totalorder %s829_s19, 1 }
   0xb   : > { %p1090_p4 = por %p102_p2, %p101_p1  ;;  %s88_s23 = ssub.s32 %s1020_s16, %s1420_s20 }
   0xc   : > { %p833_p6 = scmp.ge.s32.totalorder %s1024_s17, 1  ;;  %p89_p7 = scmp.eq.s32.totalorder %s88_s23, 0 }
   0xd   : > { %p1097_p8 = por %p108_p5, %p107_p3  ;;  %p166_p9 = scmp.lt.s32.totalorder %s1024_s17, 3 }
   0xe   : > { %s1103_s25 = scalar_select %p89_p7, %s1012_s14, %s91_s21  }
   0xf   : > { %p167_p10 = pnand %p833_p6, %p166_p9 }
  0x10   : > { %p198_p11 = scmp.lt.s32.totalorder (!%p167_p10), %s1016_s15, 1  ;;  %s1296_s10 = sand.u32 (!%p167_p10), 1, %s1008_s13  }
  0x11   : > { %170 = sbr.rel (%p167_p10) target bundleno = 3099 (0xc1b), region = 28  ;;  %s834_s11 = sshll.u32 (!%p167_p10), %s1296_s10, 3 }
  0x12   : > { %s197_s18 = scalar_lea.vmem (!%p167_p10), [#allocation7], %s834_s11  ;;  %s839_s19 = sshll.u32 (!%p167_p10), %s1016_s15, 3 }
  0x13   : > { %s684_s29 = scalar_lea.sflag (!%p167_p10), [#allocation8], %s1296_s10  ;;  %s934_s7 = scalar_lea.hbm (!%p167_p10), %s1407_s3, 16 }
  0x16   : > { %vm210_vm0 = vcmask 64512   ;;  %v1026_v0 = vmov 0   ;;  %v1027_v1 = vmov 2   ;;  %s199_s26 = scalar_select %p198_p11, %s1016_s15, 1  ;;  %v1028_v3 = vmov 1  }
  0x17   : > { %907 = vset.pattern.permute.xlu0 %v1026_v0  ;;  %212 = vst.msk [vmem:[#allocation4] sm:$0xff] %vm210_vm0, %v1026_v0  ;;  %909 = vset.pattern.permute.xlu1 %v1027_v1  ;;  %v1029_v4 = vmov inf   ;;  %v911_v8 = vld [vmem:[%s1405_s1] ss:$0 sm:$0xff]  ;;  %v913_v9 = vld [vmem:[%s1405_s1 + $0x2] ss:$0 sm:$0xff]  ;;  %v214_v22 = vlaneseq }
  0x18   : > { %s836_s27 = sshll.u32 %s199_s26, 3  ;;  %211 = vst.msk [vmem:[#allocation3] sm:$0xff] %vm210_vm0, %v1029_v4  ;;  %v912_v11 = vld [vmem:[%s1405_s1 + $0x1] ss:$0 sm:$0xff]  ;;  %s708_s26 = scalar_lea.hbm %s1407_s3, %s839_s19 }
  0x19   : > { %s201_s30 = scalar_lea.vmem %s1404_s0, %s836_s27  ;;  %v1122_v23 = vand.u32 127, %v214_v22  ;;  %s710_s27 = sshll.u32 %s197_s18, 4  ;;  %s711_s27 = int_to_ptr.vmem [resolvable:$true] %s710_s27 }
  0x1a   : > { %v213_v2 = vld [vmem:[%s201_s30] sm:$0xff]  ;;  %s712_s28 = sshll.u32 %s708_s26, 4  ;;  %s713_s28 = int_to_ptr.hbm [resolvable:$true] %s712_s28 }
  0x1b   : > { %226 = vperm.xlu0 %907, %v213_v2   ;;  %238 = vperm.xlu1 %909, %v213_v2   ;;  %vm296_vm14 = vcmp.eq.s32.totalorder %v1122_v23, 0  ;;  %s928_s30 = sshra.s32 %s713_s28, 4  ;;  %s929_s30 = int_to_ptr.hbm [resolvable:$true] %s928_s30 }
  0x1c   : > { %s930_s4 = scalar_lea.hbm %s929_s30, 8  ;;  %p935_p1 = scmp.lt.s32.totalorder %s929_s30, %s1407_s3 }
  0x1d   : > { %p931_p12 = scmp.ne.s32.totalorder %s929_s30, %s930_s4  ;;  %p936_p2 = scmp.lt.s32.totalorder %s934_s7, %s930_s4 }
  0x1e   : > { %v1126_v25 = vld [vmem:[#allocation4] sm:$0xff] }
  0x1f   : > { %v217_v5 = vld [vmem:[#allocation3] sm:$0xff]  ;;  %p932_p13 = pnand %p931_p12, %p1090_p4  ;;  %p937_p3 = por %p936_p2, %p935_p1 }
  0x20   : > { %v271_v6 = vsel %vm210_vm0, %v217_v5, inf }
  0x21   : > { %p933_p0 = pneg %p932_p13 }
  0x23   : > { %908 = vset.pattern.permute.xlu0 %v1028_v3  ;;  %p938_p5 = pnand %p937_p3, %p933_p0 }
  0x24   : > { %232 = vperm.xlu0 %908, %v213_v2  }
  0x2c   : > { %910 = vset.pattern.permute.xlu0 %v1027_v1 }
  0x45   : > { %272 = vmin.xlane.f32.xlu1 %v271_v6 }
  0x8d   : > { %v227_v7 = vpop.permute.xlu0 %226  ;;  %v239_v10 = vpop.permute.xlu1 %238 }
  0x8e   : > { %v230_v12 = vsub.f32 %v227_v7, %v911_v8  ;;  %v242_v13 = vsub.f32 %v239_v10, %v913_v9 }
  0x90   : > { %v243_v16 = vmul.f32 %v230_v12, %v230_v12  ;;  %v246_v18 = vmul.f32 %v242_v13, %v242_v13 }
  0x96   : > { %v233_v14 = vpop.permute.xlu0 %232 }
  0x97   : > { %v236_v15 = vsub.f32 %v233_v14, %v912_v11 }
  0x99   : > { %v244_v17 = vmul.f32 %v236_v15, %v236_v15 }
  0x9b   : > { %v245_v19 = vadd.f32 %v244_v17, %v243_v16 }
  0x9d   : > { %v247_v20 = vadd.f32 %v246_v18, %v245_v19 }
  0x9f   : > { %vm249_vm1 = vcmp.lt.f32.partialorder %v247_v20, inf }
  0xa0   : > { %v250_v21 = vsel %vm249_vm1, %v247_v20, inf  ;;  %v251_v27 = vsel %vm249_vm1, %v1122_v23, 0  ;;  %vm349_vm1 = vcmp.eq.s32.totalorder %v1122_v23, 1 }
  0xa1   : > { %252 = vmin.xlane.f32.xlu2 %v250_v21 }
  0xb8   : > { %v1124_v24 = vpop.xlane.xlu1 %272 }
  0xb9   : > { %vm274_vm2 = vcmp.le.f32.partialorder %v217_v5, %v1124_v24 }
  0xba   : > { %v275_v28 = vsel %vm274_vm2, %v1126_v25, 1073741824 }
  0xbb   : > { %v276_v31 = vsel %vm210_vm0, %v275_v28, 2147483647 }
  0xbc   : > { %v278_v33 = vshra.s32 %v276_v31, 16  ;;  %v277_v39 = vand.u32 65535, %v276_v31 }
  0xbe   : > { %v280_v34 = vcvt.s32.f32 %v278_v33  ;;  %v279_v41 = vcvt.s32.f32 %v277_v39 }
 0x114   : > { %v1129_v26 = vpop.xlane.xlu2 %252 }
 0x115   : > { %vm254_vm3 = vcmp.le.f32.partialorder %v250_v21, %v1129_v26  ;;  %vm291_vm6 = vcmp.le.f32.partialorder %v1124_v24, %v1129_v26 }
 0x116   : > { %v255_v29 = vsel %vm254_vm3, %v251_v27, 1073741824 }
 0x117   : > { %v257_v30 = vshra.s32 %v255_v29, 16  ;;  %v256_v35 = vand.u32 65535, %v255_v29 }
 0x119   : > { %v259_v32 = vcvt.s32.f32 %v257_v30  ;;  %v258_v37 = vcvt.s32.f32 %v256_v35 }
 0x11b   : > { %260 = vmin.xlane.f32.xlu2 %v259_v32 }
 0x123   : > { %281 = vmin.xlane.f32.xlu2 %v280_v34 }
 0x18e   : > { %v261_v36 = vpop.xlane.xlu2 %260 }
 0x18f   : > { %vm262_vm4 = vcmp.eq.f32.partialorder %v259_v32, %v261_v36  ;;  %v267_v44 = vcvt.f32.s32 %v261_v36 }
 0x190   : > { %v263_v38 = vsel %vm262_vm4, %v258_v37, inf }
 0x191   : > { %264 = vmin.xlane.f32.xlu0 %v263_v38  ;;  %v268_v48 = vshll.u32 %v267_v44, 16 }
 0x196   : > { %v282_v40 = vpop.xlane.xlu2 %281 }
 0x197   : > { %vm283_vm5 = vcmp.eq.f32.partialorder %v280_v34, %v282_v40  ;;  %v288_v45 = vcvt.f32.s32 %v282_v40 }
 0x198   : > { %v284_v42 = vsel %vm283_vm5, %v279_v41, inf }
 0x199   : > { %285 = vmin.xlane.f32.xlu2 %v284_v42  ;;  %v289_v49 = vshll.u32 %v288_v45, 16 }
 0x204   : > { %v265_v43 = vpop.xlane.xlu0 %264 }
 0x205   : > { %v266_v46 = vcvt.f32.s32 %v265_v43 }
 0x207   : > { %v269_v51 = vadd.s32 %v268_v48, %v266_v46 }
 0x20c   : > { %v286_v47 = vpop.xlane.xlu2 %285 }
 0x20d   : > { %v287_v50 = vcvt.f32.s32 %v286_v47 }
 0x20f   : > { %v290_v52 = vadd.s32 %v289_v49, %v287_v50 }
 0x211   : > { %v293_v53 = vsel %vm291_vm6, %v290_v52, %v269_v51 }
 0x212   : > { %vm294_vm7 = vcmp.eq.s32.totalorder %v1126_v25, %v293_v53  ;;  %vm300_vm8 = vcmp.eq.s32.totalorder %v1122_v23, %v293_v53  ;;  %v298_v22 = vsel %vm296_vm14, %v293_v53, 0 }
 0x213   : > { %v295_v54 = vsel %vm294_vm7, inf, %v217_v5  ;;  %v301_v56 = vsel %vm300_vm8, inf, %v247_v20 }
 0x214   : > { %v324_v55 = vsel %vm210_vm0, %v295_v54, inf  ;;  %vm303_vm9 = vcmp.lt.f32.partialorder %v301_v56, inf }
 0x215   : > { %325 = vmin.xlane.f32.xlu2 %v324_v55  ;;  %v304_v57 = vsel %vm303_vm9, %v301_v56, inf  ;;  %v305_v0 = vsel %vm303_vm9, %v1122_v23, 0 }
 0x21d   : > { %306 = vmin.xlane.f32.xlu2 %v304_v57 }
 0x288   : > { %v1143_v58 = vpop.xlane.xlu2 %325 }
 0x289   : > { %vm327_vm10 = vcmp.le.f32.partialorder %v295_v54, %v1143_v58 }
 0x28a   : > { %v328_v59 = vsel %vm327_vm10, %v1126_v25, 1073741824 }
 0x28b   : > { %v329_v60 = vsel %vm210_vm0, %v328_v59, 2147483647 }
 0x28c   : > { %v331_v61 = vshra.s32 %v329_v60, 16  ;;  %v330_v4 = vand.u32 65535, %v329_v60 }
 0x28e   : > { %v333_v62 = vcvt.s32.f32 %v331_v61  ;;  %v332_v6 = vcvt.s32.f32 %v330_v4 }
 0x290   : > { %334 = vmin.xlane.f32.xlu1 %v333_v62  ;;  %v1148_v63 = vpop.xlane.xlu2 %306 }
 0x291   : > { %vm308_vm11 = vcmp.le.f32.partialorder %v304_v57, %v1148_v63  ;;  %vm344_vm15 = vcmp.le.f32.partialorder %v1143_v58, %v1148_v63 }
 0x292   : > { %v309_v1 = vsel %vm308_vm11, %v305_v0, 1073741824  ;;  %vm402_vm11 = vcmp.eq.s32.totalorder %v1122_v23, 2 }
 0x293   : > { %v311_v2 = vshra.s32 %v309_v1, 16  ;;  %v310_v8 = vand.u32 65535, %v309_v1 }
 0x295   : > { %v313_v3 = vcvt.s32.f32 %v311_v2  ;;  %v312_v10 = vcvt.s32.f32 %v310_v8 }
 0x297   : > { %314 = vmin.xlane.f32.xlu2 %v313_v3 }
 0x303   : > { %v335_v5 = vpop.xlane.xlu1 %334 }
 0x304   : > { %vm336_vm12 = vcmp.eq.f32.partialorder %v333_v62, %v335_v5  ;;  %v341_v13 = vcvt.f32.s32 %v335_v5 }
 0x305   : > { %v337_v7 = vsel %vm336_vm12, %v332_v6, inf }
 0x306   : > { %338 = vmin.xlane.f32.xlu1 %v337_v7  ;;  %v342_v17 = vshll.u32 %v341_v13, 16 }
 0x30a   : > { %v315_v9 = vpop.xlane.xlu2 %314 }
 0x30b   : > { %vm316_vm13 = vcmp.eq.f32.partialorder %v313_v3, %v315_v9  ;;  %v321_v14 = vcvt.f32.s32 %v315_v9 }
 0x30c   : > { %v317_v11 = vsel %vm316_vm13, %v312_v10, inf }
 0x30d   : > { %318 = vmin.xlane.f32.xlu2 %v317_v11  ;;  %v322_v18 = vshll.u32 %v321_v14, 16 }
 0x379   : > { %v339_v12 = vpop.xlane.xlu1 %338 }
 0x37a   : > { %v340_v15 = vcvt.f32.s32 %v339_v12 }
 0x37c   : > { %v343_v20 = vadd.s32 %v342_v17, %v340_v15 }
 0x380   : > { %v319_v16 = vpop.xlane.xlu2 %318 }
 0x381   : > { %v320_v19 = vcvt.f32.s32 %v319_v16 }
 0x383   : > { %v323_v21 = vadd.s32 %v322_v18, %v320_v19 }
 0x385   : > { %v346_v27 = vsel %vm344_vm15, %v343_v20, %v323_v21 }
 0x386   : > { %vm347_vm2 = vcmp.eq.s32.totalorder %v1126_v25, %v346_v27  ;;  %v351_v28 = vsel %vm349_vm1, %v346_v27, %v298_v22  ;;  %vm353_vm3 = vcmp.eq.s32.totalorder %v1122_v23, %v346_v27 }
 0x387   : > { %v348_v29 = vsel %vm347_vm2, inf, %v295_v54  ;;  %v354_v30 = vsel %vm353_vm3, inf, %v301_v56 }
 0x388   : > { %v377_v31 = vsel %vm210_vm0, %v348_v29, inf  ;;  %vm356_vm4 = vcmp.lt.f32.partialorder %v354_v30, inf }
 0x389   : > { %378 = vmin.xlane.f32.xlu2 %v377_v31  ;;  %v357_v32 = vsel %vm356_vm4, %v354_v30, inf  ;;  %v358_v35 = vsel %vm356_vm4, %v1122_v23, 0 }
 0x38a   : > { %359 = vmin.xlane.f32.xlu0 %v357_v32 }
 0x3fc   : > { %v1166_v33 = vpop.xlane.xlu2 %378 }
 0x3fd   : > { %vm380_vm5 = vcmp.le.f32.partialorder %v348_v29, %v1166_v33  ;;  %v1169_v34 = vpop.xlane.xlu0 %359 }
 0x3fe   : > { %vm361_vm7 = vcmp.le.f32.partialorder %v357_v32, %v1169_v34  ;;  %v381_v36 = vsel %vm380_vm5, %v1126_v25, 1073741824  ;;  %vm397_vm10 = vcmp.le.f32.partialorder %v1166_v33, %v1169_v34 }
 0x3ff   : > { %v362_v37 = vsel %vm361_vm7, %v358_v35, 1073741824  ;;  %v382_v38 = vsel %vm210_vm0, %v381_v36, 2147483647 }
 0x400   : > { %v364_v39 = vshra.s32 %v362_v37, 16  ;;  %v384_v40 = vshra.s32 %v382_v38, 16  ;;  %v363_v43 = vand.u32 65535, %v362_v37  ;;  %v383_v44 = vand.u32 65535, %v382_v38 }
 0x402   : > { %v366_v41 = vcvt.s32.f32 %v364_v39  ;;  %v386_v42 = vcvt.s32.f32 %v384_v40  ;;  %v365_v47 = vcvt.s32.f32 %v363_v43  ;;  %v385_v48 = vcvt.s32.f32 %v383_v44 }
 0x404   : > { %367 = vmin.xlane.f32.xlu1 %v366_v41  ;;  %387 = vmin.xlane.f32.xlu2 %v386_v42 }
 0x477   : > { %v368_v45 = vpop.xlane.xlu1 %367  ;;  %v388_v46 = vpop.xlane.xlu2 %387 }
 0x478   : > { %vm369_vm8 = vcmp.eq.f32.partialorder %v366_v41, %v368_v45  ;;  %vm389_vm9 = vcmp.eq.f32.partialorder %v386_v42, %v388_v46  ;;  %v374_v51 = vcvt.f32.s32 %v368_v45  ;;  %v394_v52 = vcvt.f32.s32 %v388_v46 }
 0x479   : > { %v370_v49 = vsel %vm369_vm8, %v365_v47, inf  ;;  %v390_v50 = vsel %vm389_vm9, %v385_v48, inf  ;;  %vm455_vm9 = vcmp.eq.s32.totalorder %v1122_v23, 3 }
 0x47a   : > { %371 = vmin.xlane.f32.xlu0 %v370_v49  ;;  %391 = vmin.xlane.f32.xlu1 %v390_v50  ;;  %v375_v55 = vshll.u32 %v374_v51, 16  ;;  %v395_v56 = vshll.u32 %v394_v52, 16 }
 0x4ed   : > { %v372_v53 = vpop.xlane.xlu0 %371  ;;  %v392_v54 = vpop.xlane.xlu1 %391 }
 0x4ee   : > { %v373_v57 = vcvt.f32.s32 %v372_v53  ;;  %v393_v59 = vcvt.f32.s32 %v392_v54 }
 0x4f0   : > { %v376_v60 = vadd.s32 %v375_v55, %v373_v57  ;;  %v396_v61 = vadd.s32 %v395_v56, %v393_v59 }
 0x4f2   : > { %v399_v62 = vsel %vm397_vm10, %v396_v61, %v376_v60 }
 0x4f3   : > { %vm400_vm12 = vcmp.eq.s32.totalorder %v1126_v25, %v399_v62  ;;  %v404_v0 = vsel %vm402_vm11, %v399_v62, %v351_v28  ;;  %vm406_vm13 = vcmp.eq.s32.totalorder %v1122_v23, %v399_v62 }
 0x4f4   : > { %v401_v1 = vsel %vm400_vm12, inf, %v348_v29  ;;  %v407_v2 = vsel %vm406_vm13, inf, %v354_v30 }
 0x4f5   : > { %v430_v3 = vsel %vm210_vm0, %v401_v1, inf  ;;  %vm409_vm2 = vcmp.lt.f32.partialorder %v407_v2, inf }
 0x4f6   : > { %431 = vmin.xlane.f32.xlu2 %v430_v3  ;;  %v410_v4 = vsel %vm409_vm2, %v407_v2, inf  ;;  %v411_v7 = vsel %vm409_vm2, %v1122_v23, 0 }
 0x4f7   : > { %412 = vmin.xlane.f32.xlu0 %v410_v4 }
 0x569   : > { %v1186_v5 = vpop.xlane.xlu2 %431 }
 0x56a   : > { %vm433_vm3 = vcmp.le.f32.partialorder %v401_v1, %v1186_v5  ;;  %v1189_v6 = vpop.xlane.xlu0 %412 }
 0x56b   : > { %vm414_vm4 = vcmp.le.f32.partialorder %v410_v4, %v1189_v6  ;;  %v434_v8 = vsel %vm433_vm3, %v1126_v25, 1073741824  ;;  %vm450_vm8 = vcmp.le.f32.partialorder %v1186_v5, %v1189_v6 }
 0x56c   : > { %v415_v9 = vsel %vm414_vm4, %v411_v7, 1073741824  ;;  %v435_v10 = vsel %vm210_vm0, %v434_v8, 2147483647 }
 0x56d   : > { %v417_v11 = vshra.s32 %v415_v9, 16  ;;  %v437_v12 = vshra.s32 %v435_v10, 16  ;;  %v416_v15 = vand.u32 65535, %v415_v9  ;;  %v436_v16 = vand.u32 65535, %v435_v10 }
 0x56f   : > { %v419_v13 = vcvt.s32.f32 %v417_v11  ;;  %v439_v14 = vcvt.s32.f32 %v437_v12  ;;  %v418_v19 = vcvt.s32.f32 %v416_v15  ;;  %v438_v20 = vcvt.s32.f32 %v436_v16 }
 0x571   : > { %420 = vmin.xlane.f32.xlu1 %v419_v13  ;;  %440 = vmin.xlane.f32.xlu2 %v439_v14 }
 0x5e4   : > { %v421_v17 = vpop.xlane.xlu1 %420  ;;  %v441_v18 = vpop.xlane.xlu2 %440 }
 0x5e5   : > { %vm422_vm5 = vcmp.eq.f32.partialorder %v419_v13, %v421_v17  ;;  %vm442_vm7 = vcmp.eq.f32.partialorder %v439_v14, %v441_v18  ;;  %v427_v27 = vcvt.f32.s32 %v421_v17  ;;  %v447_v28 = vcvt.f32.s32 %v441_v18 }
 0x5e6   : > { %v423_v21 = vsel %vm422_vm5, %v418_v19, inf  ;;  %v443_v22 = vsel %vm442_vm7, %v438_v20, inf }
 0x5e7   : > { %424 = vmin.xlane.f32.xlu0 %v423_v21  ;;  %444 = vmin.xlane.f32.xlu1 %v443_v22  ;;  %v428_v31 = vshll.u32 %v427_v27, 16  ;;  %v448_v32 = vshll.u32 %v447_v28, 16 }
 0x65a   : > { %v425_v29 = vpop.xlane.xlu0 %424  ;;  %v445_v30 = vpop.xlane.xlu1 %444 }
 0x65b   : > { %v426_v35 = vcvt.f32.s32 %v425_v29  ;;  %v446_v36 = vcvt.f32.s32 %v445_v30 }
 0x65d   : > { %v429_v37 = vadd.s32 %v428_v31, %v426_v35  ;;  %v449_v38 = vadd.s32 %v448_v32, %v446_v36 }
 0x65f   : > { %v452_v39 = vsel %vm450_vm8, %v449_v38, %v429_v37 }
 0x660   : > { %vm453_vm12 = vcmp.eq.s32.totalorder %v1126_v25, %v452_v39  ;;  %v457_v40 = vsel %vm455_vm9, %v452_v39, %v404_v0  ;;  %vm459_vm13 = vcmp.eq.s32.totalorder %v1122_v23, %v452_v39 }
 0x661   : > { %v454_v41 = vsel %vm453_vm12, inf, %v401_v1  ;;  %v460_v42 = vsel %vm459_vm13, inf, %v407_v2  ;;  %vm1408_vm13 = vcmp.eq.s32.totalorder %v1122_v23, 4 }
 0x662   : > { %v483_v43 = vsel %vm210_vm0, %v454_v41, inf  ;;  %vm462_vm2 = vcmp.lt.f32.partialorder %v460_v42, inf }
 0x663   : > { %484 = vmin.xlane.f32.xlu2 %v483_v43  ;;  %v463_v44 = vsel %vm462_vm2, %v460_v42, inf  ;;  %v464_v47 = vsel %vm462_vm2, %v1122_v23, 0 }
 0x664   : > { %465 = vmin.xlane.f32.xlu0 %v463_v44 }
 0x6d6   : > { %v1206_v45 = vpop.xlane.xlu2 %484 }
 0x6d7   : > { %vm486_vm3 = vcmp.le.f32.partialorder %v454_v41, %v1206_v45  ;;  %v1209_v46 = vpop.xlane.xlu0 %465 }
 0x6d8   : > { %vm467_vm4 = vcmp.le.f32.partialorder %v463_v44, %v1209_v46  ;;  %v487_v48 = vsel %vm486_vm3, %v1126_v25, 1073741824  ;;  %vm503_vm12 = vcmp.le.f32.partialorder %v1206_v45, %v1209_v46 }
 0x6d9   : > { %v468_v49 = vsel %vm467_vm4, %v464_v47, 1073741824  ;;  %v488_v50 = vsel %vm210_vm0, %v487_v48, 2147483647 }
 0x6da   : > { %v470_v51 = vshra.s32 %v468_v49, 16  ;;  %v490_v52 = vshra.s32 %v488_v50, 16  ;;  %v469_v55 = vand.u32 65535, %v468_v49  ;;  %v489_v56 = vand.u32 65535, %v488_v50 }
 0x6dc   : > { %v472_v53 = vcvt.s32.f32 %v470_v51  ;;  %v492_v54 = vcvt.s32.f32 %v490_v52  ;;  %v471_v60 = vcvt.s32.f32 %v469_v55  ;;  %v491_v61 = vcvt.s32.f32 %v489_v56 }
 0x6de   : > { %473 = vmin.xlane.f32.xlu1 %v472_v53  ;;  %493 = vmin.xlane.f32.xlu2 %v492_v54 }
 0x751   : > { %v474_v57 = vpop.xlane.xlu1 %473  ;;  %v494_v59 = vpop.xlane.xlu2 %493 }
 0x752   : > { %vm475_vm5 = vcmp.eq.f32.partialorder %v472_v53, %v474_v57  ;;  %vm495_vm7 = vcmp.eq.f32.partialorder %v492_v54, %v494_v59  ;;  %v480_v1 = vcvt.f32.s32 %v474_v57  ;;  %v500_v2 = vcvt.f32.s32 %v494_v59 }
 0x753   : > { %v476_v62 = vsel %vm475_vm5, %v471_v60, inf  ;;  %v496_v0 = vsel %vm495_vm7, %v491_v61, inf }
 0x754   : > { %477 = vmin.xlane.f32.xlu0 %v476_v62  ;;  %497 = vmin.xlane.f32.xlu1 %v496_v0  ;;  %v481_v7 = vshll.u32 %v480_v1, 16  ;;  %v501_v8 = vshll.u32 %v500_v2, 16 }
 0x7c7   : > { %v478_v3 = vpop.xlane.xlu0 %477  ;;  %v498_v4 = vpop.xlane.xlu1 %497 }
 0x7c8   : > { %v479_v9 = vcvt.f32.s32 %v478_v3  ;;  %v499_v10 = vcvt.f32.s32 %v498_v4 }
 0x7ca   : > { %v482_v11 = vadd.s32 %v481_v7, %v479_v9  ;;  %v502_v12 = vadd.s32 %v501_v8, %v499_v10 }
 0x7cc   : > { %v505_v13 = vsel %vm503_vm12, %v502_v12, %v482_v11 }
 0x7cd   : > { %vm506_vm2 = vcmp.eq.s32.totalorder %v1126_v25, %v505_v13  ;;  %v510_v14 = vsel %vm1408_vm13, %v505_v13, %v457_v40  ;;  %vm512_vm3 = vcmp.eq.s32.totalorder %v1122_v23, %v505_v13 }
 0x7ce   : > { %v507_v15 = vsel %vm506_vm2, inf, %v454_v41  ;;  %v513_v16 = vsel %vm512_vm3, inf, %v460_v42 }
 0x7cf   : > { %v536_v17 = vsel %vm210_vm0, %v507_v15, inf  ;;  %vm515_vm4 = vcmp.lt.f32.partialorder %v513_v16, inf }
 0x7d0   : > { %537 = vmin.xlane.f32.xlu2 %v536_v17  ;;  %v516_v18 = vsel %vm515_vm4, %v513_v16, inf  ;;  %v517_v21 = vsel %vm515_vm4, %v1122_v23, 0 }
 0x7d1   : > { %518 = vmin.xlane.f32.xlu0 %v516_v18 }
 0x843   : > { %v1226_v19 = vpop.xlane.xlu2 %537 }
 0x844   : > { %vm539_vm5 = vcmp.le.f32.partialorder %v507_v15, %v1226_v19  ;;  %v1229_v20 = vpop.xlane.xlu0 %518 }
 0x845   : > { %vm520_vm7 = vcmp.le.f32.partialorder %v516_v18, %v1229_v20  ;;  %v540_v22 = vsel %vm539_vm5, %v1126_v25, 1073741824  ;;  %vm1409_vm4 = vcmp.le.f32.partialorder %v1226_v19, %v1229_v20  ;;  %vm561_vm5 = vcmp.eq.s32.totalorder %v1122_v23, 5 }
 0x846   : > { %v521_v27 = vsel %vm520_vm7, %v517_v21, 1073741824  ;;  %v541_v28 = vsel %vm210_vm0, %v540_v22, 2147483647 }
 0x847   : > { %v523_v29 = vshra.s32 %v521_v27, 16  ;;  %v543_v30 = vshra.s32 %v541_v28, 16  ;;  %v522_v35 = vand.u32 65535, %v521_v27  ;;  %v542_v36 = vand.u32 65535, %v541_v28 }
 0x849   : > { %v525_v31 = vcvt.s32.f32 %v523_v29  ;;  %v545_v32 = vcvt.s32.f32 %v543_v30  ;;  %v524_v39 = vcvt.s32.f32 %v522_v35  ;;  %v544_v40 = vcvt.s32.f32 %v542_v36 }
 0x84b   : > { %526 = vmin.xlane.f32.xlu1 %v525_v31  ;;  %546 = vmin.xlane.f32.xlu2 %v545_v32 }
 0x8be   : > { %v527_v37 = vpop.xlane.xlu1 %526  ;;  %v547_v38 = vpop.xlane.xlu2 %546 }
 0x8bf   : > { %vm528_vm2 = vcmp.eq.f32.partialorder %v525_v31, %v527_v37  ;;  %vm548_vm3 = vcmp.eq.f32.partialorder %v545_v32, %v547_v38  ;;  %v533_v43 = vcvt.f32.s32 %v527_v37  ;;  %v553_v44 = vcvt.f32.s32 %v547_v38 }
 0x8c0   : > { %v529_v41 = vsel %vm528_vm2, %v524_v39, inf  ;;  %v549_v42 = vsel %vm548_vm3, %v544_v40, inf }
 0x8c1   : > { %530 = vmin.xlane.f32.xlu0 %v529_v41  ;;  %550 = vmin.xlane.f32.xlu1 %v549_v42  ;;  %v534_v49 = vshll.u32 %v533_v43, 16  ;;  %v554_v50 = vshll.u32 %v553_v44, 16  ;;  %v292_v43 = vsel %vm291_vm6, %v1124_v24, %v1129_v26  ;;  %v345_v44 = vsel %vm344_vm15, %v1143_v58, %v1148_v63 }
 0x8c2   : > { %v451_v24 = vsel %vm450_vm8, %v1186_v5, %v1189_v6  ;;  %v504_v58 = vsel %vm503_vm12, %v1206_v45, %v1209_v46  ;;  %vm1412_vm6 = vcmp.le.f32.partialorder %v1226_v19, %v1229_v20 }
 0x934   : > { %v531_v47 = vpop.xlane.xlu0 %530  ;;  %v551_v48 = vpop.xlane.xlu1 %550 }
 0x935   : > { %v532_v51 = vcvt.f32.s32 %v531_v47  ;;  %v552_v52 = vcvt.f32.s32 %v551_v48  ;;  %v398_v47 = vsel %vm397_vm10, %v1166_v33, %v1169_v34  ;;  %v297_v48 = vsel %vm296_vm14, %v292_v43, inf }
 0x936   : > { %v350_v26 = vsel %vm349_vm1, %v345_v44, %v297_v48  ;;  %v557_v34 = vsel %vm1412_vm6, %v1226_v19, %v1229_v20  ;;  %vm1413_vm14 = vcmp.eq.s32.totalorder %v1122_v23, 4 }
 0x937   : > { %v535_v53 = vadd.s32 %v534_v49, %v532_v51  ;;  %v555_v54 = vadd.s32 %v554_v50, %v552_v52  ;;  %v403_v63 = vsel %vm402_vm11, %v398_v47, %v350_v26  ;;  %vm664_vm11 = vcmp.eq.s32.totalorder %v1122_v23, 7 }
 0x938   : > { %v456_v33 = vsel %vm455_vm9, %v451_v24, %v403_v63 }
 0x939   : > { %v558_v55 = vsel %vm1409_vm4, %v555_v54, %v535_v53  ;;  %v509_v6 = vsel %vm1413_vm14, %v504_v58, %v456_v33 }
 0x93a   : > { %vm559_vm7 = vcmp.eq.s32.totalorder %v1126_v25, %v558_v55  ;;  %v563_v56 = vsel %vm561_vm5, %v558_v55, %v510_v14  ;;  %vm565_vm2 = vcmp.eq.s32.totalorder %v1122_v23, %v558_v55  ;;  %v562_v20 = vsel %vm561_vm5, %v557_v34, %v509_v6 }
 0x93b   : > { %v560_v57 = vsel %vm559_vm7, inf, %v507_v15  ;;  %v566_v59 = vsel %vm565_vm2, inf, %v513_v16 }
 0x93c   : > { %v589_v60 = vsel %vm210_vm0, %v560_v57, inf  ;;  %vm568_vm3 = vcmp.lt.f32.partialorder %v566_v59, inf }
 0x93d   : > { %590 = vmin.xlane.f32.xlu2 %v589_v60  ;;  %v569_v61 = vsel %vm568_vm3, %v566_v59, inf  ;;  %v570_v1 = vsel %vm568_vm3, %v1122_v23, 0 }
 0x93e   : > { %571 = vmin.xlane.f32.xlu0 %v569_v61 }
 0x9b0   : > { %v1246_v62 = vpop.xlane.xlu2 %590 }
 0x9b1   : > { %vm592_vm13 = vcmp.le.f32.partialorder %v560_v57, %v1246_v62  ;;  %v572_v0 = vpop.xlane.xlu0 %571 }
 0x9b2   : > { %vm573_vm4 = vcmp.le.f32.partialorder %v569_v61, %v572_v0  ;;  %v593_v2 = vsel %vm592_vm13, %v1126_v25, 1073741824  ;;  %vm609_vm13 = vcmp.le.f32.partialorder %v1246_v62, %v572_v0 }
 0x9b3   : > { %v574_v3 = vsel %vm573_vm4, %v570_v1, 1073741824  ;;  %v594_v4 = vsel %vm210_vm0, %v593_v2, 2147483647  ;;  %vm614_vm4 = vcmp.eq.s32.totalorder %v1122_v23, 6  ;;  %v610_v45 = vsel %vm609_vm13, %v1246_v62, %v572_v0 }
 0x9b4   : > { %v576_v7 = vshra.s32 %v574_v3, 16  ;;  %v596_v8 = vshra.s32 %v594_v4, 16  ;;  %v575_v11 = vand.u32 65535, %v574_v3  ;;  %v595_v12 = vand.u32 65535, %v594_v4 }
 0x9b5   : > { %v615_v53 = vsel %vm614_vm4, %v610_v45, %v562_v20 }
 0x9b6   : > { %v578_v9 = vcvt.s32.f32 %v576_v7  ;;  %v598_v10 = vcvt.s32.f32 %v596_v8  ;;  %v577_v15 = vcvt.s32.f32 %v575_v11  ;;  %v597_v16 = vcvt.s32.f32 %v595_v12 }
 0x9b8   : > { %579 = vmin.xlane.f32.xlu1 %v578_v9  ;;  %599 = vmin.xlane.f32.xlu2 %v598_v10 }
 0xa2b   : > { %v580_v13 = vpop.xlane.xlu1 %579  ;;  %v600_v14 = vpop.xlane.xlu2 %599 }
 0xa2c   : > { %vm581_vm7 = vcmp.eq.f32.partialorder %v578_v9, %v580_v13  ;;  %vm601_vm2 = vcmp.eq.f32.partialorder %v598_v10, %v600_v14  ;;  %v586_v21 = vcvt.f32.s32 %v580_v13  ;;  %v606_v22 = vcvt.f32.s32 %v600_v14 }
 0xa2d   : > { %v582_v17 = vsel %vm581_vm7, %v577_v15, inf  ;;  %v602_v18 = vsel %vm601_vm2, %v597_v16, inf }
 0xa2e   : > { %583 = vmin.xlane.f32.xlu0 %v582_v17  ;;  %603 = vmin.xlane.f32.xlu1 %v602_v18  ;;  %v587_v29 = vshll.u32 %v586_v21, 16  ;;  %v607_v30 = vshll.u32 %v606_v22, 16 }
 0xaa1   : > { %v584_v27 = vpop.xlane.xlu0 %583  ;;  %v604_v28 = vpop.xlane.xlu1 %603 }
 0xaa2   : > { %v585_v31 = vcvt.f32.s32 %v584_v27  ;;  %v605_v32 = vcvt.f32.s32 %v604_v28 }
 0xaa4   : > { %v588_v35 = vadd.s32 %v587_v29, %v585_v31  ;;  %v608_v36 = vadd.s32 %v607_v30, %v605_v32 }
 0xaa6   : > { %v611_v37 = vsel %vm609_vm13, %v608_v36, %v588_v35 }
 0xaa7   : > { %vm612_vm3 = vcmp.eq.s32.totalorder %v1126_v25, %v611_v37  ;;  %v1259_v38 = vsel %vm614_vm4, %v611_v37, %v563_v56  ;;  %vm618_vm7 = vcmp.eq.s32.totalorder %v1122_v23, %v611_v37 }
 0xaa8   : > { %v613_v39 = vsel %vm612_vm3, inf, %v560_v57  ;;  %v619_v40 = vsel %vm618_vm7, inf, %v566_v59 }
 0xaa9   : > { %v641_v41 = vsel %vm210_vm0, %v613_v39, inf  ;;  %vm620_vm2 = vcmp.lt.f32.partialorder %v619_v40, inf }
 0xaaa   : > { %642 = vmin.xlane.f32.xlu2 %v641_v41  ;;  %v621_v42 = vsel %vm620_vm2, %v619_v40, inf  ;;  %v622_v46 = vsel %vm620_vm2, %v1122_v23, 0 }
 0xaab   : > { %623 = vmin.xlane.f32.xlu0 %v621_v42 }
 0xb1d   : > { %v1305_v5 = vpop.xlane.xlu2 %642 }
 0xb1e   : > { %vm644_vm15 = vcmp.le.f32.partialorder %v613_v39, %v1305_v5  ;;  %v1315_v49 = vpop.xlane.xlu0 %623 }
 0xb1f   : > { %vm625_vm1 = vcmp.le.f32.partialorder %v621_v42, %v1315_v49  ;;  %vm661_vm10 = vcmp.le.f32.partialorder %v1305_v5, %v1315_v49  ;;  %v645_v19 = vsel %vm644_vm15, %v1126_v25, 1073741824 }
 0xb20   : > { %v662_v50 = vsel %vm661_vm10, %v1305_v5, %v1315_v49  ;;  %v626_v51 = vsel %vm625_vm1, %v622_v46, 1073741824  ;;  %v646_v52 = vsel %vm210_vm0, %v645_v19, 2147483647 }
 0xb21   : > { %v628_v25 = vshra.s32 %v626_v51, 16  ;;  %v648_v54 = vshra.s32 %v646_v52, 16  ;;  %v665_v55 = vsel %vm664_vm11, %v662_v50, %v615_v53  ;;  %v627_v60 = vand.u32 65535, %v626_v51 }
 0xb22   : > { %667 = vst.msk [vmem:[#allocation3] sm:$0xff] %vm210_vm0, %v665_v55  ;;  %v675_v59 = vsel %vm210_vm0, %v665_v55, 0.0  ;;  %v647_v61 = vand.u32 65535, %v646_v52 }
 0xb23   : > { %v630_v56 = vcvt.s32.f32 %v628_v25  ;;  %v650_v57 = vcvt.s32.f32 %v648_v54  ;;  %677 = vst [vmem:[%s197_s18] sm:$0xff] %v675_v59  ;;  %v629_v1 = vcvt.s32.f32 %v627_v60 }
 0xb24   : > { %v649_v2 = vcvt.s32.f32 %v647_v61 }
 0xb25   : > { %631 = vmin.xlane.f32.xlu1 %v630_v56  ;;  %651 = vmin.xlane.f32.xlu2 %v650_v57 }
 0xb98   : > { %v632_v62 = vpop.xlane.xlu1 %631  ;;  %v652_v0 = vpop.xlane.xlu2 %651 }
 0xb99   : > { %vm653_vm8 = vcmp.eq.f32.partialorder %v650_v57, %v652_v0  ;;  %vm633_vm9 = vcmp.eq.f32.partialorder %v630_v56, %v632_v62 }
 0xb9a   : > { %v634_v3 = vsel %vm633_vm9, %v629_v1, inf  ;;  %v654_v4 = vsel %vm653_vm8, %v649_v2, inf }
 0xb9b   : > { %635 = vmin.xlane.f32.xlu0 %v634_v3  ;;  %655 = vmin.xlane.f32.xlu1 %v654_v4 }
 0xb9c   : > { %941 = shalt.err (!%p938_p5)
}
 0xb9d   : > { %844 = dma.vmem_to_hbm [thread:$0]  (%p1090_p4), %s711_s27, 128, %s713_s28, %s684_s29   ;;  %v638_v7 = vcvt.f32.s32 %v632_v62  ;;  %v658_v8 = vcvt.f32.s32 %v652_v0 }
 0xb9e   : > { %s694_s23 = scalar_lea.hbm %s1406_s2, %s839_s19  ;;  %s190_s26 = scalar_lea.vmem [#allocation5], %s834_s11 }
 0xb9f   : > { %v639_v11 = vshll.u32 %v638_v7, 16  ;;  %v659_v12 = vshll.u32 %v658_v8, 16  ;;  %s696_s27 = sshll.u32 %s190_s26, 4  ;;  %s698_s28 = sshll.u32 %s694_s23, 4  ;;  %s697_s27 = int_to_ptr.vmem [resolvable:$true] %s696_s27  ;;  %s699_s28 = int_to_ptr.hbm [resolvable:$true] %s698_s28 }
 0xba0   : > { %s679_s15 = scalar_lea.sflag [#allocation6], %s1296_s10  ;;  %s956_s19 = sshra.s32 %s699_s28, 4  ;;  %s957_s19 = int_to_ptr.hbm [resolvable:$true] %s956_s19 }
 0xba1   : > { %s958_s11 = scalar_lea.hbm %s957_s19, 8  ;;  %s962_s4 = scalar_lea.hbm %s1406_s2, 16 }
 0xba2   : > { %p959_p6 = scmp.ne.s32.totalorder %s957_s19, %s958_s11  ;;  %p963_p10 = scmp.lt.s32.totalorder %s957_s19, %s1406_s2 }
 0xba3   : > { %p964_p11 = scmp.lt.s32.totalorder %s962_s4, %s958_s11 }
 0xba4   : > { %p960_p7 = pnand %p959_p6, %p1090_p4 }
 0xba5   : > { %p965_p12 = por %p964_p11, %p963_p10 }
 0xba6   : > { %p961_p9 = pneg %p960_p7 }
 0xba8   : > { %p966_p13 = pnand %p965_p12, %p961_p9 }
 0xc0e   : > { %v636_v9 = vpop.xlane.xlu0 %635  ;;  %v656_v10 = vpop.xlane.xlu1 %655 }
 0xc0f   : > { %v637_v13 = vcvt.f32.s32 %v636_v9  ;;  %v657_v14 = vcvt.f32.s32 %v656_v10 }
 0xc11   : > { %v640_v15 = vadd.s32 %v639_v11, %v637_v13  ;;  %v660_v16 = vadd.s32 %v659_v12, %v657_v14 }
 0xc13   : > { %v663_v17 = vsel %vm661_vm10, %v660_v16, %v640_v15 }
 0xc14   : > { %v666_v18 = vsel %vm664_vm11, %v663_v17, %v1259_v38 }
 0xc15   : > { %668 = vst.msk [vmem:[#allocation4] sm:$0xff] %vm210_vm0, %v666_v18  ;;  %vm672_vm12 = vcmp.lt.s32.totalorder %v666_v18, 19 }
 0xc16   : > { %v673_v21 = vsel %vm672_vm12, %v666_v18, 19 }
 0xc17   : > { %v674_v22 = vsel %vm210_vm0, %v673_v21, 0 }
 0xc18   : > { %676 = vst [vmem:[%s190_s26] sm:$0xff] %v674_v22 }
 0xc19   : > { %969 = shalt.err (!%p966_p13)
}
 0xc1a   : > { %843 = dma.vmem_to_hbm [thread:$0]  (%p1090_p4), %s697_s27, 128, %s699_s28, %s679_s15  }
 0xc1b PF: > { %p854_p0 = scmp.ge.s32.totalorder %s1024_s17, 2  ;;  %s724_s10 = sand.u32 1, %s1004_s12  }
 0xc1c   : > { %s725_s7 = scalar_lea.sflag [#allocation6], %s724_s10 }
 0xc1d   : > { %p848_p1 = pnand %p854_p0, %p1097_p8 }
 0xc1f   : > { %p849_p2 = pneg %p848_p1 }
 0xc21   : > { %995 = dma.done.wait (%p849_p2), %s725_s7, 128  }
 0xc22   : > { %997 = vsyncadd (%p849_p2), %s725_s7, 4294967168  ;;  %s735_s8 = scalar_lea.sflag [#allocation8], %s724_s10 }
 0xc23   : > { %999 = dma.done.wait (%p849_p2), %s735_s8, 128  }
 0xc24   : > { %1001 = vsyncadd (%p849_p2), %s735_s8, 4294967168  ;;  %s20_s17 = sadd.s32 1, %s1024_s17   ;;  %s1414_s12 = smov %s1008_s13 }
 0xc25   : > { %p17_p3 = scmp.ge.s32.totalorder %s20_s17, 4   ;;  %s1415_s13 = smov %s1012_s14 }
 0xc26   : > { %s1416_s14 = smov %s1103_s25  ;;  %s1417_s15 = smov %s1020_s16 }
 0xc27   : > { %s1418_s16 = smov %s1420_s20  ;;  %19 = sbr.rel (!%p17_p3) target bundleno = 6 (0x6), region = 91 }
 0xc2c   :  { %741 = vsyncpa [#allocation6], 1 }
 0xc2d   :  { %743 = vsyncpa [#allocation6 + $0x1], 1 }
 0xc2e   :  { %744 = vsyncpa [#allocation8], 1 }
 0xc2f   :  { %746 = vsyncpa [#allocation8 + $0x1], 1 }

</bundles_post_ra>
